<compile_context>
chip_gen: v7x
topology: tpu7x:2x2x1
jax: 0.10.0
libtpu: 0.0.40
codegen_flags: <defaults>
</compile_context>

<pallas_src>
import jax
import jax.numpy as jnp
from jax.experimental import pallas as pl
from jax.experimental.pallas import tpu as pltpu


TM_MAX = 1024                 # max streamed-LHS rows per grid step
LHS_BLOCK_BYTES = 4 << 20     # cap per streamed bf16 LHS block (v7x VMEM friendly)
VMEM_LIMIT = 32 * 1024 * 1024


def _round_up(x, m):
    return ((x + m - 1) // m) * m


def _pick_tm(m, k):
    """Streamed-row tile: as large as possible under the VMEM block budget."""
    tm = LHS_BLOCK_BYTES // (k * 2)            # bf16 LHS block
    tm = max(8, (tm // 8) * 8)
    return min(tm, TM_MAX, _round_up(m, 8))


# ----------------------------------------------------------------------------
# Pallas kernel 1: conv GEMM   out(tm, N) = relu(cols(tm, K) @ W(K, N) + b)
# Weight fully resident (no K tiling); grid over M tiles only.
# ----------------------------------------------------------------------------
def _conv_gemm_kernel(x_ref, w_ref, b_ref, o_ref):
    y = jnp.dot(x_ref[...], w_ref[...], preferred_element_type=jnp.float32)
    o_ref[...] = jnp.maximum(y + b_ref[...], 0.0).astype(o_ref.dtype)


def _conv_gemm_relu(cols, w, b, tm):
    """cols: (Mp, K) bf16 (Mp % tm == 0); w: (K, N) bf16; b: (1, N) f32."""
    Mp, K = cols.shape
    N = w.shape[1]
    return pl.pallas_call(
        _conv_gemm_kernel,
        out_shape=jax.ShapeDtypeStruct((Mp, N), jnp.bfloat16),
        grid=(Mp // tm,),
        in_specs=[
            pl.BlockSpec((tm, K), lambda m: (m, 0)),   # streamed activation rows
            pl.BlockSpec((K, N), lambda m: (0, 0)),    # resident weight (RHS)
            pl.BlockSpec((1, N), lambda m: (0, 0)),    # resident bias
        ],
        out_specs=pl.BlockSpec((tm, N), lambda m: (m, 0)),
        compiler_params=pltpu.CompilerParams(
            dimension_semantics=("parallel",),
            vmem_limit_bytes=VMEM_LIMIT),
    )(cols, w, b)


def conv_layer(a, w, b):
    """3x3 (spatial) conv, channels-last.
    a: (B, H, W, F) bf16; w: (9*F, N) bf16; b: (1, N) f32.
    Returns (B, H-2, W-2, N) bf16.  For the 3-D convs N = Do*Cout (depth folded
    into the banded weight); for conv4 N = Cout."""
    B, H, W, F = a.shape
    Ho, Wo = H - 2, W - 2
    taps = [a[:, j:j + Ho, k:k + Wo, :] for j in range(3) for k in range(3)]
    cols = jnp.concatenate(taps, axis=-1).reshape(B * Ho * Wo, 9 * F)
    M, K = cols.shape
    tm = _pick_tm(M, K)
    Mp = _round_up(M, tm)
    cols = jnp.pad(cols, ((0, Mp - M), (0, 0)))        # fused into the im2col copy
    out = _conv_gemm_relu(cols, w, b, tm)              # (Mp, N)
    return out[:M].reshape(B, Ho, Wo, w.shape[1])


# ----------------------------------------------------------------------------
# Pallas kernel 2: fused dense head (dense1 relu -> dense2 relu -> dense3)
# All weights resident; grid over batch tiles (streamed LHS rows).
# ----------------------------------------------------------------------------
def _dense_head_kernel(x_ref, w5_ref, b5_ref, w6_ref, b6_ref, w7_ref, b7_ref,
                       o_ref):
    h = jnp.dot(x_ref[...], w5_ref[...], preferred_element_type=jnp.float32)
    h = jnp.maximum(h + b5_ref[...], 0.0).astype(jnp.bfloat16)
    h = jnp.dot(h, w6_ref[...], preferred_element_type=jnp.float32)
    h = jnp.maximum(h + b6_ref[...], 0.0).astype(jnp.bfloat16)
    y = jnp.dot(h, w7_ref[...], preferred_element_type=jnp.float32)
    o_ref[...] = y + b7_ref[...]


def dense_head(x, p):
    """x: (B, flat) bf16 -> logits (B, num_classes) f32."""
    B, F = x.shape
    nc = p["w7"].shape[1]
    tb = min(512, _round_up(B, 16))                      # bf16 packs 16 sublanes
    tb = min(tb, max(16, (LHS_BLOCK_BYTES // (F * 2)) // 16 * 16))
    Bp = _round_up(B, tb)
    xp = jnp.pad(x, ((0, Bp - B), (0, 0)))
    out = pl.pallas_call(
        _dense_head_kernel,
        out_shape=jax.ShapeDtypeStruct((Bp, nc), jnp.float32),
        grid=(Bp // tb,),
        in_specs=[
            pl.BlockSpec((tb, F), lambda i: (i, 0)),
            pl.BlockSpec((F, 256), lambda i: (0, 0)),
            pl.BlockSpec((1, 256), lambda i: (0, 0)),
            pl.BlockSpec((256, 128), lambda i: (0, 0)),
            pl.BlockSpec((1, 128), lambda i: (0, 0)),
            pl.BlockSpec((128, nc), lambda i: (0, 0)),
            pl.BlockSpec((1, nc), lambda i: (0, 0)),
        ],
        out_specs=pl.BlockSpec((tb, nc), lambda i: (i, 0)),
        compiler_params=pltpu.CompilerParams(
            dimension_semantics=("parallel",),
            vmem_limit_bytes=VMEM_LIMIT),
    )(xp, p["w5"], p["b5"], p["w6"], p["b6"], p["w7"], p["b7"])
    return out[:B]


# ----------------------------------------------------------------------------
# Parameters: raw (PyTorch-layout) init + one-time kernel-layout preparation
# ----------------------------------------------------------------------------
def _kaiming(key, shape, fan_in):
    return jax.random.normal(key, shape, jnp.float32) * (2.0 / fan_in) ** 0.5


def init_hybridsn_params(key, in_channels, patch_size, num_classes):
    ks = jax.random.split(key, 7)
    p = {}
    p["w1"] = _kaiming(ks[0], (8, 1, 7, 3, 3), 1 * 7 * 3 * 3)
    p["b1"] = jnp.zeros((8,), jnp.float32)
    p["w2"] = _kaiming(ks[1], (16, 8, 5, 3, 3), 8 * 5 * 3 * 3)
    p["b2"] = jnp.zeros((16,), jnp.float32)
    p["w3"] = _kaiming(ks[2], (32, 16, 3, 3, 3), 16 * 3 * 3 * 3)
    p["b3"] = jnp.zeros((32,), jnp.float32)
    d3 = in_channels - 12
    c4_in = 32 * d3
    p["w4"] = _kaiming(ks[3], (64, c4_in, 3, 3), c4_in * 9)
    p["b4"] = jnp.zeros((64,), jnp.float32)
    s4 = patch_size - 8
    flat = 64 * s4 * s4
    p["w5"] = _kaiming(ks[4], (256, flat), flat)
    p["b5"] = jnp.zeros((256,), jnp.float32)
    p["w6"] = _kaiming(ks[5], (128, 256), 256)
    p["b6"] = jnp.zeros((128,), jnp.float32)
    p["w7"] = _kaiming(ks[6], (num_classes, 128), 128)
    p["b7"] = jnp.zeros((128,), jnp.float32)[:num_classes] * 0 + jnp.zeros(
        (num_classes,), jnp.float32)
    p["b7"] = jnp.zeros((num_classes,), jnp.float32)
    return p


def _banded_conv3d_weight(w, b, D):
    """Fold the depth (kd) dimension of a Conv3d weight into a dense banded
    matrix so the layer becomes a 9-tap 2-D conv over merged (D*Cin) channels.
      w: (Cout, Cin, kd, kh, kw) -> Wd: (kh*kw*D*Cin, Do*Cout)
      Wd[(j*kw+k)*D*Cin + d*Cin + ci, do*Cout + co] = w[co, ci, d-do, j, k]."""
    cout, cin, kd, kh, kw = w.shape
    Do = D - kd + 1
    sel = (jnp.arange(D)[:, None, None]
           == jnp.arange(kd)[None, :, None] + jnp.arange(Do)[None, None, :]
           ).astype(w.dtype)                                   # (D, kd, Do)
    wd = jnp.einsum("dio,cnijk->jkdnoc", sel, w)               # (kh,kw,D,Cin,Do,Cout)
    wd = wd.reshape(kh * kw * D * cin, Do * cout).astype(jnp.bfloat16)
    bd = jnp.broadcast_to(b[None, :], (Do, cout)).reshape(1, Do * cout)
    return wd, bd.astype(jnp.float32)


def prepare_params(raw, in_channels, patch_size):
    """One-time reorder / band / bf16-cast of all weights."""
    p = {}
    p["w1"], p["b1"] = _banded_conv3d_weight(raw["w1"], raw["b1"], in_channels)
    p["w2"], p["b2"] = _banded_conv3d_weight(raw["w2"], raw["b2"], in_channels - 6)
    p["w3"], p["b3"] = _banded_conv3d_weight(raw["w3"], raw["b3"], in_channels - 10)

    do3 = in_channels - 12
    # conv4: PyTorch input-channel index is (c*Do3 + d); ours is (d*32 + c).
    w4 = raw["w4"].reshape(64, 32, do3, 3, 3).transpose(3, 4, 2, 1, 0)
    p["w4"] = w4.reshape(9 * do3 * 32, 64).astype(jnp.bfloat16)
    p["b4"] = raw["b4"].reshape(1, 64).astype(jnp.float32)

    s4 = patch_size - 8
    # dense1: PyTorch flatten order is (c, h, w); ours is (h, w, c).
    w5 = raw["w5"].reshape(256, 64, s4, s4).transpose(0, 2, 3, 1).reshape(256, -1)
    p["w5"] = w5.T.astype(jnp.bfloat16)                  # (flat, 256)
    p["b5"] = raw["b5"].reshape(1, 256).astype(jnp.float32)
    p["w6"] = raw["w6"].T.astype(jnp.bfloat16)           # (256, 128)
    p["b6"] = raw["b6"].reshape(1, 128).astype(jnp.float32)
    p["w7"] = raw["w7"].T.astype(jnp.bfloat16)           # (128, num_classes)
    p["b7"] = raw["b7"].reshape(1, -1).astype(jnp.float32)
    return p


# ----------------------------------------------------------------------------
# Forward pass (Pallas kernels on all GEMMs; all inter-layer glue is reshapes)
# ----------------------------------------------------------------------------
def hybridsn_forward(p, x):
    # x: (B, 1, D, H, W) f32 -- same layout as the PyTorch Conv3d input.
    B, _, D, H, W = x.shape
    a = x.astype(jnp.bfloat16).reshape(B, D, H, W).transpose(0, 2, 3, 1)  # (B,H,W,D)
    a = conv_layer(a, p["w1"], p["b1"])      # (B, H-2, W-2, (D-6)*8)
    a = conv_layer(a, p["w2"], p["b2"])      # (B, H-4, W-4, (D-10)*16)
    a = conv_layer(a, p["w3"], p["b3"])      # (B, H-6, W-6, (D-12)*32)
    a = conv_layer(a, p["w4"], p["b4"])      # (B, H-8, W-8, 64)
    _, H4, W4, C4 = a.shape
    a = a.reshape(B, H4 * W4 * C4)           # flatten is a free reshape (w5 permuted)
    # Dropout layers are identity in eval/inference mode.
    return dense_head(a, p)                  # (B, num_classes) f32


# ----------------------------------------------------------------------------
# Plain-JAX reference (raw params, standard NCDHW/NCHW layout, same bf16 math)
# ----------------------------------------------------------------------------
def _im2col_3d_std(x, kd, kh, kw):
    B, Cin, D, H, W = x.shape
    Do, Ho, Wo = D - kd + 1, H - kh + 1, W - kw + 1
    patches = []
    for i in range(kd):
        for j in range(kh):
            for k in range(kw):
                patches.append(x[:, :, i:i + Do, j:j + Ho, k:k + Wo])
    p = jnp.stack(patches, axis=2).reshape(B, Cin * kd * kh * kw, Do, Ho, Wo)
    p = p.transpose(0, 2, 3, 4, 1).reshape(B * Do * Ho * Wo, Cin * kd * kh * kw)
    return p, (B, Do, Ho, Wo)


def _im2col_2d_std(x, kh, kw):
    B, Cin, H, W = x.shape
    Ho, Wo = H - kh + 1, W - kw + 1
    patches = []
    for j in range(kh):
        for k in range(kw):
            patches.append(x[:, :, j:j + Ho, k:k + Wo])
    p = jnp.stack(patches, axis=2).reshape(B, Cin * kh * kw, Ho, Wo)
    p = p.transpose(0, 2, 3, 1).reshape(B * Ho * Wo, Cin * kh * kw)
    return p, (B, Ho, Wo)


def hybridsn_reference(raw, x):
    def mm(a, w, b, relu):
        y = jnp.dot(a.astype(jnp.bfloat16), w.astype(jnp.bfloat16),
                    preferred_element_type=jnp.float32) + b[None, :]
        return jnp.maximum(y, 0.0) if relu else y

    def c3(a, w, b):
        cout = w.shape[0]
        cols, (B, Do, Ho, Wo) = _im2col_3d_std(a, *w.shape[2:])
        y = mm(cols, w.reshape(cout, -1).T, b, True).astype(jnp.bfloat16)
        return y.reshape(B, Do, Ho, Wo, cout).transpose(0, 4, 1, 2, 3)

    def c2(a, w, b):
        cout = w.shape[0]
        cols, (B, Ho, Wo) = _im2col_2d_std(a, *w.shape[2:])
        y = mm(cols, w.reshape(cout, -1).T, b, True).astype(jnp.bfloat16)
        return y.reshape(B, Ho, Wo, cout).transpose(0, 3, 1, 2)

    a = x.astype(jnp.bfloat16)
    a = c3(a, raw["w1"], raw["b1"])
    a = c3(a, raw["w2"], raw["b2"])
    a = c3(a, raw["w3"], raw["b3"])
    B, C, D, H, W = a.shape
    a = a.reshape(B, C * D, H, W)
    a = c2(a, raw["w4"], raw["b4"])
    a = a.reshape(B, -1)
    a = mm(a, raw["w5"].T, raw["b5"], True).astype(jnp.bfloat16)
    a = mm(a, raw["w6"].T, raw["b6"], True).astype(jnp.bfloat16)
    return mm(a, raw["w7"].T, raw["b7"], False)


if __name__ == "__main__":
    # Small but valid shapes: spectral channels >= 13, patch_size >= 9.
    B, in_channels, patch_size, num_classes = 2, 16, 11, 10

    key = jax.random.PRNGKey(0)
    k_x, k_p = jax.random.split(key)
    x = jax.random.normal(k_x, (B, 1, in_channels, patch_size, patch_size),
                          jnp.float32)
    raw = init_hybridsn_params(k_p, in_channels, patch_size, num_classes)
    prepared = prepare_params(raw, in_channels, patch_size)

    fwd = jax.jit(hybridsn_forward)
    out = jax.block_until_ready(fwd(prepared, x))

    ref = hybridsn_reference(raw, x)
    assert out.shape == (B, num_classes), out.shape
    max_err = float(jnp.max(jnp.abs(out - ref)))
    assert jnp.allclose(out, ref, atol=3e-2, rtol=3e-2), max_err

    print("KERNEL_OK")
</pallas_src>

<mosaic_0001>
module attributes {stable_mosaic.version = 11 : i64} {
  func.func @_conv_gemm_kernel(%arg0: i32, %arg1: memref<168x144xbf16, #tpu.memory_space<vmem>>, %arg2: memref<144x80xbf16, #tpu.memory_space<vmem>>, %arg3: memref<1x80xf32, #tpu.memory_space<vmem>>, %arg4: memref<168x80xbf16, #tpu.memory_space<vmem>>) attributes {dimension_semantics = [#tpu.dimension_semantics<parallel>], iteration_bounds = array<i64: 1>, scalar_prefetch = 0 : i64, scratch_operands = 0 : i64, tpu.core_type = #tpu.core_type<tc>, window_params = [{transform_indices = @transform_0, window_bounds = array<i64: 168, 144>}, {pipeline_mode = #tpu.pipeline_mode<synchronous>, transform_indices = @transform_1, window_bounds = array<i64: 144, 80>}, {pipeline_mode = #tpu.pipeline_mode<synchronous>, transform_indices = @transform_2, window_bounds = array<i64: 1, 80>}, {transform_indices = @transform_3, window_bounds = array<i64: 168, 80>}]} {
    %c0 = arith.constant 0 : index
    %c0_0 = arith.constant 0 : index
    %0 = vector.load %arg1[%c0, %c0_0] : memref<168x144xbf16, #tpu.memory_space<vmem>>, vector<168x144xbf16>
    %c0_1 = arith.constant 0 : index
    %c0_2 = arith.constant 0 : index
    %1 = vector.load %arg2[%c0_1, %c0_2] : memref<144x80xbf16, #tpu.memory_space<vmem>>, vector<144x80xbf16>
    %cst = arith.constant dense<0.000000e+00> : vector<168x80xf32>
    %2 = tpu.matmul %0, %1, %cst {dimension_numbers = #tpu.dot_dimension_numbers<[1], [0], [0], [1], [0, 0, 1, 1], [], []>} : vector<168x144xbf16>, vector<144x80xbf16>, vector<168x80xf32> -> vector<168x80xf32>
    %c0_3 = arith.constant 0 : index
    %c0_4 = arith.constant 0 : index
    %3 = vector.load %arg3[%c0_3, %c0_4] : memref<1x80xf32, #tpu.memory_space<vmem>>, vector<1x80xf32>
    %4 = vector.broadcast %3 : vector<1x80xf32> to vector<168x80xf32>
    %5 = arith.addf %2, %4 : vector<168x80xf32>
    %cst_5 = arith.constant 0.000000e+00 : f32
    %6 = vector.broadcast %cst_5 : f32 to vector<168x80xf32>
    %7 = arith.maximumf %5, %6 : vector<168x80xf32>
    %8 = arith.truncf %7 : vector<168x80xf32> to vector<168x80xbf16>
    %c0_6 = arith.constant 0 : index
    %c0_7 = arith.constant 0 : index
    %9 = vector.load %arg4[%c0_6, %c0_7] : memref<168x80xbf16, #tpu.memory_space<vmem>>, vector<168x80xbf16>
    tpu.vector_store %arg4[%c0_6, %c0_7], %8 {strides = array<i32>} : memref<168x80xbf16, #tpu.memory_space<vmem>>, vector<168x80xbf16>,
    return
  }
  func.func @transform_0(%arg0: i32) -> (i32, i32) {
    %c0_i32 = arith.constant 0 : i32
    %c0_i32_0 = arith.constant 0 : i32
    return %arg0, %c0_i32 : i32, i32
  }
  func.func @transform_1(%arg0: i32) -> (i32, i32) {
    %c0_i32 = arith.constant 0 : i32
    %c0_i32_0 = arith.constant 0 : i32
    %c0_i32_1 = arith.constant 0 : i32
    return %c0_i32, %c0_i32_0 : i32, i32
  }
  func.func @transform_2(%arg0: i32) -> (i32, i32) {
    %c0_i32 = arith.constant 0 : i32
    %c0_i32_0 = arith.constant 0 : i32
    %c0_i32_1 = arith.constant 0 : i32
    return %c0_i32, %c0_i32_0 : i32, i32
  }
  func.func @transform_3(%arg0: i32) -> (i32, i32) {
    %c0_i32 = arith.constant 0 : i32
    %c0_i32_0 = arith.constant 0 : i32
    return %arg0, %c0_i32 : i32, i32
  }
}

module attributes {stable_mosaic.version = 11 : i64} {
  func.func @_conv_gemm_kernel(%arg0: i32, %arg1: memref<104x720xbf16, #tpu.memory_space<vmem>>, %arg2: memref<720x96xbf16, #tpu.memory_space<vmem>>, %arg3: memref<1x96xf32, #tpu.memory_space<vmem>>, %arg4: memref<104x96xbf16, #tpu.memory_space<vmem>>) attributes {dimension_semantics = [#tpu.dimension_semantics<parallel>], iteration_bounds = array<i64: 1>, scalar_prefetch = 0 : i64, scratch_operands = 0 : i64, tpu.core_type = #tpu.core_type<tc>, window_params = [{transform_indices = @transform_0, window_bounds = array<i64: 104, 720>}, {pipeline_mode = #tpu.pipeline_mode<synchronous>, transform_indices = @transform_1, window_bounds = array<i64: 720, 96>}, {pipeline_mode = #tpu.pipeline_mode<synchronous>, transform_indices = @transform_2, window_bounds = array<i64: 1, 96>}, {transform_indices = @transform_3, window_bounds = array<i64: 104, 96>}]} {
    %c0 = arith.constant 0 : index
    %c0_0 = arith.constant 0 : index
    %0 = vector.load %arg1[%c0, %c0_0] : memref<104x720xbf16, #tpu.memory_space<vmem>>, vector<104x720xbf16>
    %c0_1 = arith.constant 0 : index
    %c0_2 = arith.constant 0 : index
    %1 = vector.load %arg2[%c0_1, %c0_2] : memref<720x96xbf16, #tpu.memory_space<vmem>>, vector<720x96xbf16>
    %cst = arith.constant dense<0.000000e+00> : vector<104x96xf32>
    %2 = tpu.matmul %0, %1, %cst {dimension_numbers = #tpu.dot_dimension_numbers<[1], [0], [0], [1], [0, 0, 1, 1], [], []>} : vector<104x720xbf16>, vector<720x96xbf16>, vector<104x96xf32> -> vector<104x96xf32>
    %c0_3 = arith.constant 0 : index
    %c0_4 = arith.constant 0 : index
    %3 = vector.load %arg3[%c0_3, %c0_4] : memref<1x96xf32, #tpu.memory_space<vmem>>, vector<1x96xf32>
    %4 = vector.broadcast %3 : vector<1x96xf32> to vector<104x96xf32>
    %5 = arith.addf %2, %4 : vector<104x96xf32>
    %cst_5 = arith.constant 0.000000e+00 : f32
    %6 = vector.broadcast %cst_5 : f32 to vector<104x96xf32>
    %7 = arith.maximumf %5, %6 : vector<104x96xf32>
    %8 = arith.truncf %7 : vector<104x96xf32> to vector<104x96xbf16>
    %c0_6 = arith.constant 0 : index
    %c0_7 = arith.constant 0 : index
    %9 = vector.load %arg4[%c0_6, %c0_7] : memref<104x96xbf16, #tpu.memory_space<vmem>>, vector<104x96xbf16>
    tpu.vector_store %arg4[%c0_6, %c0_7], %8 {strides = array<i32>} : memref<104x96xbf16, #tpu.memory_space<vmem>>, vector<104x96xbf16>,
    return
  }
  func.func @transform_0(%arg0: i32) -> (i32, i32) {
    %c0_i32 = arith.constant 0 : i32
    %c0_i32_0 = arith.constant 0 : i32
    return %arg0, %c0_i32 : i32, i32
  }
  func.func @transform_1(%arg0: i32) -> (i32, i32) {
    %c0_i32 = arith.constant 0 : i32
    %c0_i32_0 = arith.constant 0 : i32
    %c0_i32_1 = arith.constant 0 : i32
    return %c0_i32, %c0_i32_0 : i32, i32
  }
  func.func @transform_2(%arg0: i32) -> (i32, i32) {
    %c0_i32 = arith.constant 0 : i32
    %c0_i32_0 = arith.constant 0 : i32
    %c0_i32_1 = arith.constant 0 : i32
    return %c0_i32, %c0_i32_0 : i32, i32
  }
  func.func @transform_3(%arg0: i32) -> (i32, i32) {
    %c0_i32 = arith.constant 0 : i32
    %c0_i32_0 = arith.constant 0 : i32
    return %arg0, %c0_i32 : i32, i32
  }
}

module attributes {stable_mosaic.version = 11 : i64} {
  func.func @_conv_gemm_kernel(%arg0: i32, %arg1: memref<56x864xbf16, #tpu.memory_space<vmem>>, %arg2: memref<864x128xbf16, #tpu.memory_space<vmem>>, %arg3: memref<1x128xf32, #tpu.memory_space<vmem>>, %arg4: memref<56x128xbf16, #tpu.memory_space<vmem>>) attributes {dimension_semantics = [#tpu.dimension_semantics<parallel>], iteration_bounds = array<i64: 1>, scalar_prefetch = 0 : i64, scratch_operands = 0 : i64, tpu.core_type = #tpu.core_type<tc>, window_params = [{transform_indices = @transform_0, window_bounds = array<i64: 56, 864>}, {pipeline_mode = #tpu.pipeline_mode<synchronous>, transform_indices = @transform_1, window_bounds = array<i64: 864, 128>}, {pipeline_mode = #tpu.pipeline_mode<synchronous>, transform_indices = @transform_2, window_bounds = array<i64: 1, 128>}, {transform_indices = @transform_3, window_bounds = array<i64: 56, 128>}]} {
    %c0 = arith.constant 0 : index
    %c0_0 = arith.constant 0 : index
    %0 = vector.load %arg1[%c0, %c0_0] : memref<56x864xbf16, #tpu.memory_space<vmem>>, vector<56x864xbf16>
    %c0_1 = arith.constant 0 : index
    %c0_2 = arith.constant 0 : index
    %1 = vector.load %arg2[%c0_1, %c0_2] : memref<864x128xbf16, #tpu.memory_space<vmem>>, vector<864x128xbf16>
    %cst = arith.constant dense<0.000000e+00> : vector<56x128xf32>
    %2 = tpu.matmul %0, %1, %cst {dimension_numbers = #tpu.dot_dimension_numbers<[1], [0], [0], [1], [0, 0, 1, 1], [], []>} : vector<56x864xbf16>, vector<864x128xbf16>, vector<56x128xf32> -> vector<56x128xf32>
    %c0_3 = arith.constant 0 : index
    %c0_4 = arith.constant 0 : index
    %3 = vector.load %arg3[%c0_3, %c0_4] : memref<1x128xf32, #tpu.memory_space<vmem>>, vector<1x128xf32>
    %4 = vector.broadcast %3 : vector<1x128xf32> to vector<56x128xf32>
    %5 = arith.addf %2, %4 : vector<56x128xf32>
    %cst_5 = arith.constant 0.000000e+00 : f32
    %6 = vector.broadcast %cst_5 : f32 to vector<56x128xf32>
    %7 = arith.maximumf %5, %6 : vector<56x128xf32>
    %8 = arith.truncf %7 : vector<56x128xf32> to vector<56x128xbf16>
    %c0_6 = arith.constant 0 : index
    %c0_7 = arith.constant 0 : index
    %9 = vector.load %arg4[%c0_6, %c0_7] : memref<56x128xbf16, #tpu.memory_space<vmem>>, vector<56x128xbf16>
    tpu.vector_store %arg4[%c0_6, %c0_7], %8 {strides = array<i32>} : memref<56x128xbf16, #tpu.memory_space<vmem>>, vector<56x128xbf16>,
    return
  }
  func.func @transform_0(%arg0: i32) -> (i32, i32) {
    %c0_i32 = arith.constant 0 : i32
    %c0_i32_0 = arith.constant 0 : i32
    return %arg0, %c0_i32 : i32, i32
  }
  func.func @transform_1(%arg0: i32) -> (i32, i32) {
    %c0_i32 = arith.constant 0 : i32
    %c0_i32_0 = arith.constant 0 : i32
    %c0_i32_1 = arith.constant 0 : i32
    return %c0_i32, %c0_i32_0 : i32, i32
  }
  func.func @transform_2(%arg0: i32) -> (i32, i32) {
    %c0_i32 = arith.constant 0 : i32
    %c0_i32_0 = arith.constant 0 : i32
    %c0_i32_1 = arith.constant 0 : i32
    return %c0_i32, %c0_i32_0 : i32, i32
  }
  func.func @transform_3(%arg0: i32) -> (i32, i32) {
    %c0_i32 = arith.constant 0 : i32
    %c0_i32_0 = arith.constant 0 : i32
    return %arg0, %c0_i32 : i32, i32
  }
}

module attributes {stable_mosaic.version = 11 : i64} {
  func.func @_conv_gemm_kernel(%arg0: i32, %arg1: memref<24x1152xbf16, #tpu.memory_space<vmem>>, %arg2: memref<1152x64xbf16, #tpu.memory_space<vmem>>, %arg3: memref<1x64xf32, #tpu.memory_space<vmem>>, %arg4: memref<24x64xbf16, #tpu.memory_space<vmem>>) attributes {dimension_semantics = [#tpu.dimension_semantics<parallel>], iteration_bounds = array<i64: 1>, scalar_prefetch = 0 : i64, scratch_operands = 0 : i64, tpu.core_type = #tpu.core_type<tc>, window_params = [{transform_indices = @transform_0, window_bounds = array<i64: 24, 1152>}, {pipeline_mode = #tpu.pipeline_mode<synchronous>, transform_indices = @transform_1, window_bounds = array<i64: 1152, 64>}, {pipeline_mode = #tpu.pipeline_mode<synchronous>, transform_indices = @transform_2, window_bounds = array<i64: 1, 64>}, {transform_indices = @transform_3, window_bounds = array<i64: 24, 64>}]} {
    %c0 = arith.constant 0 : index
    %c0_0 = arith.constant 0 : index
    %0 = vector.load %arg1[%c0, %c0_0] : memref<24x1152xbf16, #tpu.memory_space<vmem>>, vector<24x1152xbf16>
    %c0_1 = arith.constant 0 : index
    %c0_2 = arith.constant 0 : index
    %1 = vector.load %arg2[%c0_1, %c0_2] : memref<1152x64xbf16, #tpu.memory_space<vmem>>, vector<1152x64xbf16>
    %cst = arith.constant dense<0.000000e+00> : vector<24x64xf32>
    %2 = tpu.matmul %0, %1, %cst {dimension_numbers = #tpu.dot_dimension_numbers<[1], [0], [0], [1], [0, 0, 1, 1], [], []>} : vector<24x1152xbf16>, vector<1152x64xbf16>, vector<24x64xf32> -> vector<24x64xf32>
    %c0_3 = arith.constant 0 : index
    %c0_4 = arith.constant 0 : index
    %3 = vector.load %arg3[%c0_3, %c0_4] : memref<1x64xf32, #tpu.memory_space<vmem>>, vector<1x64xf32>
    %4 = vector.broadcast %3 : vector<1x64xf32> to vector<24x64xf32>
    %5 = arith.addf %2, %4 : vector<24x64xf32>
    %cst_5 = arith.constant 0.000000e+00 : f32
    %6 = vector.broadcast %cst_5 : f32 to vector<24x64xf32>
    %7 = arith.maximumf %5, %6 : vector<24x64xf32>
    %8 = arith.truncf %7 : vector<24x64xf32> to vector<24x64xbf16>
    %c0_6 = arith.constant 0 : index
    %c0_7 = arith.constant 0 : index
    %9 = vector.load %arg4[%c0_6, %c0_7] : memref<24x64xbf16, #tpu.memory_space<vmem>>, vector<24x64xbf16>
    tpu.vector_store %arg4[%c0_6, %c0_7], %8 {strides = array<i32>} : memref<24x64xbf16, #tpu.memory_space<vmem>>, vector<24x64xbf16>,
    return
  }
  func.func @transform_0(%arg0: i32) -> (i32, i32) {
    %c0_i32 = arith.constant 0 : i32
    %c0_i32_0 = arith.constant 0 : i32
    return %arg0, %c0_i32 : i32, i32
  }
  func.func @transform_1(%arg0: i32) -> (i32, i32) {
    %c0_i32 = arith.constant 0 : i32
    %c0_i32_0 = arith.constant 0 : i32
    %c0_i32_1 = arith.constant 0 : i32
    return %c0_i32, %c0_i32_0 : i32, i32
  }
  func.func @transform_2(%arg0: i32) -> (i32, i32) {
    %c0_i32 = arith.constant 0 : i32
    %c0_i32_0 = arith.constant 0 : i32
    %c0_i32_1 = arith.constant 0 : i32
    return %c0_i32, %c0_i32_0 : i32, i32
  }
  func.func @transform_3(%arg0: i32) -> (i32, i32) {
    %c0_i32 = arith.constant 0 : i32
    %c0_i32_0 = arith.constant 0 : i32
    return %arg0, %c0_i32 : i32, i32
  }
}

module attributes {stable_mosaic.version = 11 : i64} {
  func.func @_dense_head_kernel(%arg0: i32, %arg1: memref<16x576xbf16, #tpu.memory_space<vmem>>, %arg2: memref<576x256xbf16, #tpu.memory_space<vmem>>, %arg3: memref<1x256xf32, #tpu.memory_space<vmem>>, %arg4: memref<256x128xbf16, #tpu.memory_space<vmem>>, %arg5: memref<1x128xf32, #tpu.memory_space<vmem>>, %arg6: memref<128x10xbf16, #tpu.memory_space<vmem>>, %arg7: memref<1x10xf32, #tpu.memory_space<vmem>>, %arg8: memref<16x10xf32, #tpu.memory_space<vmem>>) attributes {dimension_semantics = [#tpu.dimension_semantics<parallel>], iteration_bounds = array<i64: 1>, scalar_prefetch = 0 : i64, scratch_operands = 0 : i64, tpu.core_type = #tpu.core_type<tc>, window_params = [{transform_indices = @transform_0, window_bounds = array<i64: 16, 576>}, {pipeline_mode = #tpu.pipeline_mode<synchronous>, transform_indices = @transform_1, window_bounds = array<i64: 576, 256>}, {pipeline_mode = #tpu.pipeline_mode<synchronous>, transform_indices = @transform_2, window_bounds = array<i64: 1, 256>}, {pipeline_mode = #tpu.pipeline_mode<synchronous>, transform_indices = @transform_3, window_bounds = array<i64: 256, 128>}, {pipeline_mode = #tpu.pipeline_mode<synchronous>, transform_indices = @transform_4, window_bounds = array<i64: 1, 128>}, {pipeline_mode = #tpu.pipeline_mode<synchronous>, transform_indices = @transform_5, window_bounds = array<i64: 128, 10>}, {pipeline_mode = #tpu.pipeline_mode<synchronous>, transform_indices = @transform_6, window_bounds = array<i64: 1, 10>}, {transform_indices = @transform_7, window_bounds = array<i64: 16, 10>}]} {
    %c0 = arith.constant 0 : index
    %c0_0 = arith.constant 0 : index
    %0 = vector.load %arg1[%c0, %c0_0] : memref<16x576xbf16, #tpu.memory_space<vmem>>, vector<16x576xbf16>
    %c0_1 = arith.constant 0 : index
    %c0_2 = arith.constant 0 : index
    %1 = vector.load %arg2[%c0_1, %c0_2] : memref<576x256xbf16, #tpu.memory_space<vmem>>, vector<576x256xbf16>
    %cst = arith.constant dense<0.000000e+00> : vector<16x256xf32>
    %2 = tpu.matmul %0, %1, %cst {dimension_numbers = #tpu.dot_dimension_numbers<[1], [0], [0], [1], [0, 0, 1, 1], [], []>} : vector<16x576xbf16>, vector<576x256xbf16>, vector<16x256xf32> -> vector<16x256xf32>
    %c0_3 = arith.constant 0 : index
    %c0_4 = arith.constant 0 : index
    %3 = vector.load %arg3[%c0_3, %c0_4] : memref<1x256xf32, #tpu.memory_space<vmem>>, vector<1x256xf32>
    %4 = vector.broadcast %3 : vector<1x256xf32> to vector<16x256xf32>
    %5 = arith.addf %2, %4 : vector<16x256xf32>
    %cst_5 = arith.constant 0.000000e+00 : f32
    %6 = vector.broadcast %cst_5 : f32 to vector<16x256xf32>
    %7 = arith.maximumf %5, %6 : vector<16x256xf32>
    %8 = arith.truncf %7 : vector<16x256xf32> to vector<16x256xbf16>
    %c0_6 = arith.constant 0 : index
    %c0_7 = arith.constant 0 : index
    %9 = vector.load %arg4[%c0_6, %c0_7] : memref<256x128xbf16, #tpu.memory_space<vmem>>, vector<256x128xbf16>
    %cst_8 = arith.constant dense<0.000000e+00> : vector<16x128xf32>
    %10 = tpu.matmul %8, %9, %cst_8 {dimension_numbers = #tpu.dot_dimension_numbers<[1], [0], [0], [1], [0, 0, 1, 1], [], []>} : vector<16x256xbf16>, vector<256x128xbf16>, vector<16x128xf32> -> vector<16x128xf32>
    %c0_9 = arith.constant 0 : index
    %c0_10 = arith.constant 0 : index
    %11 = vector.load %arg5[%c0_9, %c0_10] : memref<1x128xf32, #tpu.memory_space<vmem>>, vector<1x128xf32>
    %12 = vector.broadcast %11 : vector<1x128xf32> to vector<16x128xf32>
    %13 = arith.addf %10, %12 : vector<16x128xf32>
    %cst_11 = arith.constant 0.000000e+00 : f32
    %14 = vector.broadcast %cst_11 : f32 to vector<16x128xf32>
    %15 = arith.maximumf %13, %14 : vector<16x128xf32>
    %16 = arith.truncf %15 : vector<16x128xf32> to vector<16x128xbf16>
    %c0_12 = arith.constant 0 : index
    %c0_13 = arith.constant 0 : index
    %17 = vector.load %arg6[%c0_12, %c0_13] : memref<128x10xbf16, #tpu.memory_space<vmem>>, vector<128x10xbf16>
    %cst_14 = arith.constant dense<0.000000e+00> : vector<16x10xf32>
    %18 = tpu.matmul %16, %17, %cst_14 {dimension_numbers = #tpu.dot_dimension_numbers<[1], [0], [0], [1], [0, 0, 1, 1], [], []>} : vector<16x128xbf16>, vector<128x10xbf16>, vector<16x10xf32> -> vector<16x10xf32>
    %c0_15 = arith.constant 0 : index
    %c0_16 = arith.constant 0 : index
    %19 = vector.load %arg7[%c0_15, %c0_16] : memref<1x10xf32, #tpu.memory_space<vmem>>, vector<1x10xf32>
    %20 = vector.broadcast %19 : vector<1x10xf32> to vector<16x10xf32>
    %21 = arith.addf %18, %20 : vector<16x10xf32>
    %c0_17 = arith.constant 0 : index
    %c0_18 = arith.constant 0 : index
    %22 = vector.load %arg8[%c0_17, %c0_18] : memref<16x10xf32, #tpu.memory_space<vmem>>, vector<16x10xf32>
    tpu.vector_store %arg8[%c0_17, %c0_18], %21 {strides = array<i32>} : memref<16x10xf32, #tpu.memory_space<vmem>>, vector<16x10xf32>,
    return
  }
  func.func @transform_0(%arg0: i32) -> (i32, i32) {
    %c0_i32 = arith.constant 0 : i32
    %c0_i32_0 = arith.constant 0 : i32
    return %arg0, %c0_i32 : i32, i32
  }
  func.func @transform_1(%arg0: i32) -> (i32, i32) {
    %c0_i32 = arith.constant 0 : i32
    %c0_i32_0 = arith.constant 0 : i32
    %c0_i32_1 = arith.constant 0 : i32
    return %c0_i32, %c0_i32_0 : i32, i32
  }
  func.func @transform_2(%arg0: i32) -> (i32, i32) {
    %c0_i32 = arith.constant 0 : i32
    %c0_i32_0 = arith.constant 0 : i32
    %c0_i32_1 = arith.constant 0 : i32
    return %c0_i32, %c0_i32_0 : i32, i32
  }
  func.func @transform_3(%arg0: i32) -> (i32, i32) {
    %c0_i32 = arith.constant 0 : i32
    %c0_i32_0 = arith.constant 0 : i32
    %c0_i32_1 = arith.constant 0 : i32
    return %c0_i32, %c0_i32_0 : i32, i32
  }
  func.func @transform_4(%arg0: i32) -> (i32, i32) {
    %c0_i32 = arith.constant 0 : i32
    %c0_i32_0 = arith.constant 0 : i32
    %c0_i32_1 = arith.constant 0 : i32
    return %c0_i32, %c0_i32_0 : i32, i32
  }
  func.func @transform_5(%arg0: i32) -> (i32, i32) {
    %c0_i32 = arith.constant 0 : i32
    %c0_i32_0 = arith.constant 0 : i32
    %c0_i32_1 = arith.constant 0 : i32
    return %c0_i32, %c0_i32_0 : i32, i32
  }
  func.func @transform_6(%arg0: i32) -> (i32, i32) {
    %c0_i32 = arith.constant 0 : i32
    %c0_i32_0 = arith.constant 0 : i32
    %c0_i32_1 = arith.constant 0 : i32
    return %c0_i32, %c0_i32_0 : i32, i32
  }
  func.func @transform_7(%arg0: i32) -> (i32, i32) {
    %c0_i32 = arith.constant 0 : i32
    %c0_i32_0 = arith.constant 0 : i32
    return %arg0, %c0_i32 : i32, i32
  }
}

</mosaic_0001>

<bundles_post_ra>
// kernel: hybridsn_forward.5
= control target key start
LH: loop header
LB: loop body
LE: loop exit
PB: predicated region body
PF: predicated region fallthrough
CT: control target
= control target key end

     0   :  { %v642_v0 = vmov 0   ;;  %vm211_vm0 = vcmask 130048   ;;  %vm471_vm1 = vcmask 650240   ;;  %s874_s1 = inlined_call_operand.vmem [shape: bf16[144,80], index: 1, kind: input, shape index: {}]   ;;  %s875_s0 = inlined_call_operand.vmem [shape: bf16[168,144], index: 0, kind: input, shape index: {}]   ;;  %s876_s2 = inlined_call_operand.vmem [shape: f32[1,80], index: 2, kind: input, shape index: {}]   ;;  %s877_s3 = inlined_call_operand.vmem [shape: bf16[168,80], index: 3, kind: output, shape index: {}]  }
   0x1   :  { %245 = vmatprep.subr.bf16.mxu0 %v642_v0  ;;  %v601_v1 = vld [vmem:[%s874_s1] sm:$0xff]   ;;  %582 = vmatprep.subr.bf16.mxu1 %v642_v0  ;;  %v602_v2 = vld [vmem:[%s874_s1 + $0x8] sm:$0xff]   ;;  %v603_v3 = vld [vmem:[%s874_s1 + $0x10] sm:$0xff]  }
   0x2   :  { %246 = vmatpush1.bf16.msra.mxu0 %v601_v1  ;;  %591 = vmatpush1.bf16.msra.mxu1 %v601_v1  ;;  %v604_v4 = vld [vmem:[%s874_s1 + $0x18] sm:$0xff]   ;;  %v612_v5 = vld [vmem:[%s875_s0 + $0x4] ss:$8 sps:$4 sm:$0xff]   ;;  %v607_v9 = vld [vmem:[%s874_s1 + $0x30] sm:$0xff]  }
   0x3   :  { %247 = vmatprep.subr.bf16.mxu0 %v642_v0  ;;  %583 = vmatprep.subr.bf16.mxu1 %v642_v0  ;;  %v615_v6 = vld [vmem:[%s875_s0 + $0x64] ss:$8 sps:$4 sm:$0xff]   ;;  %v608_v10 = vld [vmem:[%s874_s1 + $0x38] sm:$0xff]   ;;  %v610_v12 = vld [vmem:[%s875_s0] ss:$8 sps:$4 sm:$0xff]  }
   0x4   :  { %529 = vmatprep.mubr.msk.bf16.mxu0 %vm211_vm0, %v612_v5  ;;  %535 = vmatprep.mubr.msk.bf16.mxu1 %vm211_vm0, %v615_v6  ;;  %v605_v7 = vld [vmem:[%s874_s1 + $0x20] sm:$0xff]   ;;  %v606_v8 = vld [vmem:[%s874_s1 + $0x28] sm:$0xff]   ;;  %v616_v14 = vld [vmem:[%s875_s0 + $0x14] ss:$8 sps:$4 sm:$0xff]  }
   0x5   :  { %v609_v11 = vld [vmem:[%s874_s1 + $0x40] sm:$0xff]   ;;  %v619_v15 = vld [vmem:[%s875_s0 + $0x74] ss:$8 sps:$4 sm:$0xff]   ;;  %v618_v16 = vld [vmem:[%s875_s0 + $0x10] ss:$8 sps:$4 sm:$0xff]  }
   0x6   :  { %248 = vmatpush1.bf16.msra.mxu0 %v602_v2  ;;  %592 = vmatpush1.bf16.msra.mxu1 %v602_v2  ;;  %v613_v13 = vld [vmem:[%s875_s0 + $0x60] ss:$8 sps:$4 sm:$0xff]   ;;  %v623_v17 = vld [vmem:[%s875_s0 + $0x70] ss:$8 sps:$4 sm:$0xff]   ;;  %v621_v18 = vld [vmem:[%s875_s0 + $0x24] ss:$8 sps:$4 sm:$0xff]  }
   0x7   :  { %249 = vmatprep.subr.bf16.mxu0 %v642_v0  ;;  %584 = vmatprep.subr.bf16.mxu1 %v642_v0  ;;  %v625_v19 = vld [vmem:[%s875_s0 + $0x84] ss:$8 sps:$4 sm:$0xff]   ;;  %v624_v20 = vld [vmem:[%s875_s0 + $0x20] ss:$8 sps:$4 sm:$0xff]   ;;  %v627_v22 = vld [vmem:[%s875_s0 + $0x34] ss:$8 sps:$4 sm:$0xff]  }
   0x8   :  { %v629_v21 = vld [vmem:[%s875_s0 + $0x80] ss:$8 sps:$4 sm:$0xff]   ;;  %v631_v23 = vld [vmem:[%s875_s0 + $0x94] ss:$8 sps:$4 sm:$0xff]   ;;  %v630_v25 = vld [vmem:[%s875_s0 + $0x30] ss:$8 sps:$4 sm:$0xff]  }
   0x9   :  { %v35_v24 = vld [vmem:[%s875_s0 + $0xa0] sm:$0xff]  ;;  %v635_v26 = vld [vmem:[%s875_s0 + $0x90] ss:$8 sps:$4 sm:$0xff]   ;;  %v638_v31 = vld [vmem:[%s875_s0 + $0x54] ss:$8 sps:$4 sm:$0xff]  }
   0xa   :  { %250 = vmatpush1.bf16.msra.mxu0 %v603_v3  ;;  %593 = vmatpush1.bf16.msra.mxu1 %v603_v3  ;;  %v633_v27 = vld [vmem:[%s875_s0 + $0x44] ss:$8 sps:$4 sm:$0xff]   ;;  %v519_v28 = vcombine.high %v35_v24, %v35_v24  ;;  %v636_v29 = vld [vmem:[%s875_s0 + $0x40] ss:$8 sps:$4 sm:$0xff]   ;;  %v518_v30 = vcombine.low %v35_v24, %v35_v24  ;;  %v641_v32 = vld [vmem:[%s875_s0 + $0x50] ss:$8 sps:$4 sm:$0xff]  }
   0xb   :  { %251 = vmatprep.subr.bf16.mxu0 %v642_v0  ;;  %585 = vmatprep.subr.bf16.mxu1 %v642_v0  ;;  %v767_v33 = vld [vmem:[%s876_s2] ss:$0 sm:$0xff] }
   0xe   :  { %252 = vmatpush1.bf16.msra.mxu0 %v604_v4  ;;  %594 = vmatpush1.bf16.msra.mxu1 %v604_v4 }
   0xf   :  { %253 = vmatprep.subr.bf16.mxu0 %v642_v0  ;;  %586 = vmatprep.subr.bf16.mxu1 %v642_v0 }
  0x12   :  { %254 = vmatpush1.bf16.msra.mxu0 %v605_v7  ;;  %595 = vmatpush1.bf16.msra.mxu1 %v605_v7 }
  0x13   :  { %255 = vmatprep.subr.bf16.mxu0 %v642_v0  ;;  %587 = vmatprep.subr.bf16.mxu1 %v642_v0 }
  0x16   :  { %256 = vmatpush1.bf16.msra.mxu0 %v606_v8  ;;  %596 = vmatpush1.bf16.msra.mxu1 %v606_v8 }
  0x17   :  { %257 = vmatprep.subr.bf16.mxu0 %v642_v0  ;;  %588 = vmatprep.subr.bf16.mxu1 %v642_v0 }
  0x1a   :  { %258 = vmatpush1.bf16.msra.mxu0 %v607_v9  ;;  %597 = vmatpush1.bf16.msra.mxu1 %v607_v9 }
  0x1b   :  { %259 = vmatprep.subr.bf16.mxu0 %v642_v0  ;;  %589 = vmatprep.subr.bf16.mxu1 %v642_v0 }
  0x1e   :  { %260 = vmatpush1.bf16.msra.mxu0 %v608_v10  ;;  %598 = vmatpush1.bf16.msra.mxu1 %v608_v10 }
  0x1f   :  { %261 = vmatprep.subr.bf16.mxu0 %v642_v0  ;;  %590 = vmatprep.subr.bf16.mxu1 %v642_v0 }
  0x22   :  { %262 = vmatpush1.bf16.msra.mxu0 %v609_v11  ;;  %599 = vmatpush1.bf16.msra.mxu1 %v609_v11 }
  0x25   :  { %278 = vmatmul.mubr.bf16.vlgmr.msra.gmra.mrb[0].mxu0 %v610_v12  ;;  %326 = vmatmul.mubr.bf16.vlgmr.msra.gmra.mrb[0].mxu1 %v613_v13 }
  0x26   :  { %530 = vmatprep.mubr.msk.bf16.mxu0 %vm211_vm0, %v616_v14  ;;  %536 = vmatprep.mubr.msk.bf16.mxu1 %vm211_vm0, %v619_v15 }
  0x2d   :  { %286 = vmatmul.mubr.bf16.gmra.mrb[4].mxu0 %v618_v16  ;;  %334 = vmatmul.mubr.bf16.gmra.mrb[4].mxu1 %v623_v17 }
  0x2e   :  { %531 = vmatprep.mubr.msk.bf16.mxu0 %vm211_vm0, %v621_v18  ;;  %537 = vmatprep.mubr.msk.bf16.mxu1 %vm211_vm0, %v625_v19 }
  0x35   :  { %294 = vmatmul.mubr.bf16.gmra.mrb[8].mxu0 %v624_v20  ;;  %342 = vmatmul.mubr.bf16.gmra.mrb[8].mxu1 %v629_v21 }
  0x36   :  { %532 = vmatprep.mubr.msk.bf16.mxu0 %vm211_vm0, %v627_v22  ;;  %538 = vmatprep.mubr.msk.bf16.mxu1 %vm211_vm0, %v631_v23 }
  0x3d   :  { %302 = vmatmul.mubr.bf16.gmra.mrb[12].mxu0 %v630_v25  ;;  %350 = vmatmul.mubr.bf16.gmra.mrb[12].mxu1 %v635_v26 }
  0x3e   :  { %533 = vmatprep.mubr.msk.bf16.mxu0 %vm211_vm0, %v633_v27  ;;  %539 = vmatprep.mubr.msk.bf16.mxu1 %vm211_vm0, %v519_v28 }
  0x45   :  { %310 = vmatmul.mubr.bf16.gmra.mrb[16].mxu0 %v636_v29  ;;  %358 = vmatmul.mubr.bf16.gmra.mrb[16].mxu1 %v518_v30 }
  0x46   :  { %534 = vmatprep.mubr.msk.bf16.mxu0 %vm211_vm0, %v638_v31 }
  0x4d   :  { %318 = vmatmul.mubr.bf16.gmra.mrb[20].mxu0 %v641_v32 }
  0xf8   :  { %v279_v34 = vpop.f32.mrb[0].mxu0  ;;  %v327_v35 = vpop.f32.mrb[0].mxu1 }
  0xf9   :  { %v280_v36 = vadd.f32 %v767_v33, %v279_v34  ;;  %v281_v37 = vpop.f32.mrb[1].mxu0  ;;  %v328_v38 = vadd.f32 %v767_v33, %v327_v35  ;;  %v329_v39 = vpop.f32.mrb[1].mxu1 }
  0xfa   :  { %v282_v40 = vpop.f32.mrb[2].mxu0  ;;  %v330_v41 = vpop.f32.mrb[2].mxu1 }
  0xfb   :  { %v365_v42 = vmax.f32 %v280_v36, 0.0  ;;  %v283_v43 = vadd.f32 %v767_v33, %v282_v40  ;;  %v284_v44 = vpop.f32.mrb[3].mxu0  ;;  %v377_v45 = vmax.f32 %v328_v38, 0.0  ;;  %v331_v46 = vadd.f32 %v767_v33, %v330_v41  ;;  %v332_v47 = vpop.f32.mrb[3].mxu1 }
  0xfd   :  { %v561_v48 = vpack.c.bf16 %v365_v42, %v365_v42  ;;  %v366_v49 = vmax.f32 %v283_v43, 0.0  ;;  %v573_v50 = vpack.c.bf16 %v377_v45, %v377_v45  ;;  %v378_v51 = vmax.f32 %v331_v46, 0.0 }
  0xff   :  { %472 = vst.msk [vmem:[%s877_s3] sm:$0xf] %vm471_vm1, %v561_v48  ;;  %v562_v52 = vpack.c.bf16 %v366_v49, %v366_v49  ;;  %484 = vst.msk [vmem:[%s877_s3 + $0x30] sm:$0xf] %vm471_vm1, %v573_v50  ;;  %v574_v53 = vpack.c.bf16 %v378_v51, %v378_v51 }
 0x100   :  { %v287_v54 = vpop.f32.mrb[4].mxu0  ;;  %v335_v55 = vpop.f32.mrb[4].mxu1 }
 0x101   :  { %473 = vst.msk [vmem:[%s877_s3 + $0x4] sm:$0xf] %vm471_vm1, %v562_v52  ;;  %v288_v56 = vadd.f32 %v767_v33, %v287_v54  ;;  %v289_v57 = vpop.f32.mrb[5].mxu0  ;;  %485 = vst.msk [vmem:[%s877_s3 + $0x34] sm:$0xf] %vm471_vm1, %v574_v53  ;;  %v336_v58 = vadd.f32 %v767_v33, %v335_v55  ;;  %v337_v59 = vpop.f32.mrb[5].mxu1 }
 0x102   :  { %v290_v60 = vpop.f32.mrb[6].mxu0  ;;  %v338_v61 = vpop.f32.mrb[6].mxu1 }
 0x103   :  { %v367_v62 = vmax.f32 %v288_v56, 0.0  ;;  %v291_v63 = vadd.f32 %v767_v33, %v290_v60  ;;  %v292_v0 = vpop.f32.mrb[7].mxu0  ;;  %v379_v1 = vmax.f32 %v336_v58, 0.0  ;;  %v339_v2 = vadd.f32 %v767_v33, %v338_v61  ;;  %v340_v3 = vpop.f32.mrb[7].mxu1 }
 0x105   :  { %v563_v4 = vpack.c.bf16 %v367_v62, %v367_v62  ;;  %v368_v5 = vmax.f32 %v291_v63, 0.0  ;;  %v575_v6 = vpack.c.bf16 %v379_v1, %v379_v1  ;;  %v380_v7 = vmax.f32 %v339_v2, 0.0 }
 0x107   :  { %474 = vst.msk [vmem:[%s877_s3 + $0x8] sm:$0xf] %vm471_vm1, %v563_v4  ;;  %v564_v8 = vpack.c.bf16 %v368_v5, %v368_v5  ;;  %486 = vst.msk [vmem:[%s877_s3 + $0x38] sm:$0xf] %vm471_vm1, %v575_v6  ;;  %v576_v9 = vpack.c.bf16 %v380_v7, %v380_v7 }
 0x108   :  { %v295_v10 = vpop.f32.mrb[8].mxu0  ;;  %v343_v11 = vpop.f32.mrb[8].mxu1 }
 0x109   :  { %475 = vst.msk [vmem:[%s877_s3 + $0xc] sm:$0xf] %vm471_vm1, %v564_v8  ;;  %v296_v12 = vadd.f32 %v767_v33, %v295_v10  ;;  %v297_v13 = vpop.f32.mrb[9].mxu0  ;;  %487 = vst.msk [vmem:[%s877_s3 + $0x3c] sm:$0xf] %vm471_vm1, %v576_v9  ;;  %v344_v14 = vadd.f32 %v767_v33, %v343_v11  ;;  %v345_v15 = vpop.f32.mrb[9].mxu1 }
 0x10a   :  { %v298_v16 = vpop.f32.mrb[10].mxu0  ;;  %v346_v17 = vpop.f32.mrb[10].mxu1 }
 0x10b   :  { %v369_v18 = vmax.f32 %v296_v12, 0.0  ;;  %v299_v19 = vadd.f32 %v767_v33, %v298_v16  ;;  %v300_v20 = vpop.f32.mrb[11].mxu0  ;;  %v381_v21 = vmax.f32 %v344_v14, 0.0  ;;  %v347_v22 = vadd.f32 %v767_v33, %v346_v17  ;;  %v348_v23 = vpop.f32.mrb[11].mxu1 }
 0x10d   :  { %v565_v24 = vpack.c.bf16 %v369_v18, %v369_v18  ;;  %v370_v25 = vmax.f32 %v299_v19, 0.0  ;;  %v577_v26 = vpack.c.bf16 %v381_v21, %v381_v21  ;;  %v382_v27 = vmax.f32 %v347_v22, 0.0 }
 0x10f   :  { %476 = vst.msk [vmem:[%s877_s3 + $0x10] sm:$0xf] %vm471_vm1, %v565_v24  ;;  %v566_v28 = vpack.c.bf16 %v370_v25, %v370_v25  ;;  %488 = vst.msk [vmem:[%s877_s3 + $0x40] sm:$0xf] %vm471_vm1, %v577_v26  ;;  %v578_v29 = vpack.c.bf16 %v382_v27, %v382_v27 }
 0x110   :  { %v303_v30 = vpop.f32.mrb[12].mxu0  ;;  %v351_v31 = vpop.f32.mrb[12].mxu1 }
 0x111   :  { %477 = vst.msk [vmem:[%s877_s3 + $0x14] sm:$0xf] %vm471_vm1, %v566_v28  ;;  %v304_v32 = vadd.f32 %v767_v33, %v303_v30  ;;  %v305_v34 = vpop.f32.mrb[13].mxu0  ;;  %489 = vst.msk [vmem:[%s877_s3 + $0x44] sm:$0xf] %vm471_vm1, %v578_v29  ;;  %v352_v35 = vadd.f32 %v767_v33, %v351_v31  ;;  %v353_v36 = vpop.f32.mrb[13].mxu1 }
 0x112   :  { %v306_v37 = vpop.f32.mrb[14].mxu0  ;;  %v354_v38 = vpop.f32.mrb[14].mxu1 }
 0x113   :  { %v371_v39 = vmax.f32 %v304_v32, 0.0  ;;  %v307_v40 = vadd.f32 %v767_v33, %v306_v37  ;;  %v308_v41 = vpop.f32.mrb[15].mxu0  ;;  %v383_v42 = vmax.f32 %v352_v35, 0.0  ;;  %v355_v43 = vadd.f32 %v767_v33, %v354_v38  ;;  %v356_v44 = vpop.f32.mrb[15].mxu1 }
 0x115   :  { %v567_v45 = vpack.c.bf16 %v371_v39, %v371_v39  ;;  %v372_v46 = vmax.f32 %v307_v40, 0.0  ;;  %v579_v47 = vpack.c.bf16 %v383_v42, %v383_v42  ;;  %v384_v48 = vmax.f32 %v355_v43, 0.0 }
 0x117   :  { %478 = vst.msk [vmem:[%s877_s3 + $0x18] sm:$0xf] %vm471_vm1, %v567_v45  ;;  %v568_v49 = vpack.c.bf16 %v372_v46, %v372_v46  ;;  %490 = vst.msk [vmem:[%s877_s3 + $0x48] sm:$0xf] %vm471_vm1, %v579_v47  ;;  %v580_v50 = vpack.c.bf16 %v384_v48, %v384_v48 }
 0x118   :  { %v311_v51 = vpop.f32.mrb[16].mxu0  ;;  %v359_v52 = vpop.f32.mrb[16].mxu1 }
 0x119   :  { %479 = vst.msk [vmem:[%s877_s3 + $0x1c] sm:$0xf] %vm471_vm1, %v568_v49  ;;  %v312_v53 = vadd.f32 %v767_v33, %v311_v51  ;;  %v313_v54 = vpop.f32.mrb[17].mxu0  ;;  %491 = vst.msk [vmem:[%s877_s3 + $0x4c] sm:$0xf] %vm471_vm1, %v580_v50  ;;  %v360_v55 = vadd.f32 %v767_v33, %v359_v52  ;;  %v361_v56 = vpop.f32.mrb[17].mxu1 }
 0x11a   :  { %v314_v57 = vpop.f32.mrb[18].mxu0  ;;  %v362_v58 = vpop.f32.mrb[18].mxu1 }
 0x11b   :  { %v373_v59 = vmax.f32 %v312_v53, 0.0  ;;  %v315_v60 = vadd.f32 %v767_v33, %v314_v57  ;;  %v316_v61 = vpop.f32.mrb[19].mxu0  ;;  %v385_v62 = vmax.f32 %v360_v55, 0.0  ;;  %v363_v63 = vpop.f32.mrb[19].mxu1 }
 0x11d   :  { %v569_v0 = vpack.c.bf16 %v373_v59, %v373_v59  ;;  %v374_v1 = vmax.f32 %v315_v60, 0.0  ;;  %v581_v2 = vpack.c.bf16 %v385_v62, %v385_v62 }
 0x11f   :  { %480 = vst.msk [vmem:[%s877_s3 + $0x20] sm:$0xf] %vm471_vm1, %v569_v0  ;;  %v570_v3 = vpack.c.bf16 %v374_v1, %v374_v1  ;;  %492 = vst.msk [vmem:[%s877_s3 + $0x50] sm:$0xf] %vm471_vm1, %v581_v2 }
 0x120   :  { %v319_v4 = vpop.f32.mrb[20].mxu0 }
 0x121   :  { %481 = vst.msk [vmem:[%s877_s3 + $0x24] sm:$0xf] %vm471_vm1, %v570_v3  ;;  %v320_v5 = vadd.f32 %v767_v33, %v319_v4  ;;  %v321_v6 = vpop.f32.mrb[21].mxu0 }
 0x122   :  { %v322_v7 = vpop.f32.mrb[22].mxu0 }
 0x123   :  { %v375_v8 = vmax.f32 %v320_v5, 0.0  ;;  %v323_v9 = vadd.f32 %v767_v33, %v322_v7  ;;  %v324_v10 = vpop.f32.mrb[23].mxu0 }
 0x125   :  { %v571_v11 = vpack.c.bf16 %v375_v8, %v375_v8  ;;  %v376_v12 = vmax.f32 %v323_v9, 0.0 }
 0x127   :  { %482 = vst.msk [vmem:[%s877_s3 + $0x28] sm:$0xf] %vm471_vm1, %v571_v11  ;;  %v572_v13 = vpack.c.bf16 %v376_v12, %v376_v12 }
 0x129   :  { %483 = vst.msk [vmem:[%s877_s3 + $0x2c] sm:$0xf] %vm471_vm1, %v572_v13 }

// kernel: hybridsn_forward.6
= control target key start
LH: loop header
LB: loop body
LE: loop exit
PB: predicated region body
PF: predicated region fallthrough
CT: control target
= control target key end

     0   :  { %v1354_v34 = vmov 0   ;;  %vm615_vm0 = vcmask 654336   ;;  %vm967_vm1 = vcmask 781312   ;;  %s1754_s1 = inlined_call_operand.vmem [shape: bf16[720,96], index: 1, kind: input, shape index: {}]   ;;  %s1755_s0 = inlined_call_operand.vmem [shape: bf16[104,720], index: 0, kind: input, shape index: {}]   ;;  %s1756_s2 = inlined_call_operand.vmem [shape: f32[1,96], index: 2, kind: input, shape index: {}]   ;;  %s1757_s3 = inlined_call_operand.vmem [shape: bf16[104,96], index: 3, kind: output, shape index: {}]  }
   0x1   :  { %v1249_v0 = vld [vmem:[%s1754_s1 + $0x40] sm:$0xff]   ;;  %v1253_v4 = vld [vmem:[%s1754_s1 + $0x48] sm:$0xff]   ;;  %v1257_v8 = vld [vmem:[%s1754_s1 + $0x50] sm:$0xff]  }
   0x2   :  { %v1250_v1 = vld [vmem:[%s1754_s1 + $0xc0] sm:$0xff]   ;;  %1106 = vmatprep.subr.bf16.mxu0 %v1249_v0  ;;  %v1254_v5 = vld [vmem:[%s1754_s1 + $0xc8] sm:$0xff]   ;;  %v1258_v9 = vld [vmem:[%s1754_s1 + $0xd0] sm:$0xff]  }
   0x3   :  { %v1251_v2 = vld [vmem:[%s1754_s1] sm:$0xff]   ;;  %1164 = vmatprep.subr.bf16.mxu1 %v1250_v1  ;;  %v1255_v6 = vld [vmem:[%s1754_s1 + $0x8] sm:$0xff]   ;;  %v1259_v10 = vld [vmem:[%s1754_s1 + $0x10] sm:$0xff]  }
   0x4   :  { %v1252_v3 = vld [vmem:[%s1754_s1 + $0x80] sm:$0xff]   ;;  %1107 = vmatpush3.bf16.msra.mxu0 %v1251_v2  ;;  %v1256_v7 = vld [vmem:[%s1754_s1 + $0x88] sm:$0xff]   ;;  %v1260_v11 = vld [vmem:[%s1754_s1 + $0x90] sm:$0xff]  }
   0x5   :  { %1165 = vmatpush3.bf16.msra.mxu1 %v1252_v3  ;;  %1108 = vmatprep.subr.bf16.mxu0 %v1253_v4  ;;  %v1261_v12 = vld [vmem:[%s1754_s1 + $0x58] sm:$0xff]   ;;  %v1265_v16 = vld [vmem:[%s1754_s1 + $0x60] sm:$0xff]   ;;  %v1269_v20 = vld [vmem:[%s1754_s1 + $0x68] sm:$0xff]  }
   0x6   :  { %1166 = vmatprep.subr.bf16.mxu1 %v1254_v5  ;;  %v1262_v13 = vld [vmem:[%s1754_s1 + $0xd8] sm:$0xff]   ;;  %v1266_v17 = vld [vmem:[%s1754_s1 + $0xe0] sm:$0xff]   ;;  %v1270_v21 = vld [vmem:[%s1754_s1 + $0xe8] sm:$0xff]  }
   0x7   :  { %v1263_v14 = vld [vmem:[%s1754_s1 + $0x18] sm:$0xff]   ;;  %v1267_v18 = vld [vmem:[%s1754_s1 + $0x20] sm:$0xff]   ;;  %v1271_v22 = vld [vmem:[%s1754_s1 + $0x28] sm:$0xff]  }
   0x8   :  { %1109 = vmatpush3.bf16.msra.mxu0 %v1255_v6  ;;  %v1264_v15 = vld [vmem:[%s1754_s1 + $0x98] sm:$0xff]   ;;  %v1268_v19 = vld [vmem:[%s1754_s1 + $0xa0] sm:$0xff]   ;;  %v1272_v23 = vld [vmem:[%s1754_s1 + $0xa8] sm:$0xff]  }
   0x9   :  { %1167 = vmatpush3.bf16.msra.mxu1 %v1256_v7  ;;  %1110 = vmatprep.subr.bf16.mxu0 %v1257_v8  ;;  %v1273_v24 = vld [vmem:[%s1754_s1 + $0x70] sm:$0xff]   ;;  %v1277_v28 = vld [vmem:[%s1754_s1 + $0x78] sm:$0xff]   ;;  %v1284_v35 = vld [vmem:[%s1755_s0 + $0x8] ss:$24 sps:$4 sm:$0xff]  }
   0xa   :  { %1168 = vmatprep.subr.bf16.mxu1 %v1258_v9  ;;  %v1274_v25 = vld [vmem:[%s1754_s1 + $0xf0] sm:$0xff]   ;;  %v1278_v29 = vld [vmem:[%s1754_s1 + $0xf8] sm:$0xff]   ;;  %v1286_v36 = vld [vmem:[%s1755_s0 + $0xc] ss:$24 sps:$4 sm:$0xff]  }
   0xb   :  { %v1275_v26 = vld [vmem:[%s1754_s1 + $0x30] sm:$0xff]   ;;  %v1279_v30 = vld [vmem:[%s1754_s1 + $0x38] sm:$0xff]   ;;  %v1287_v37 = vld [vmem:[%s1754_s1 + $0x100] sm:$0xff]   ;;  %757 = vmatprep.mubr.bf16.mxu1 %v1286_v36 }
   0xc   :  { %1111 = vmatpush3.bf16.msra.mxu0 %v1259_v10  ;;  %v1276_v27 = vld [vmem:[%s1754_s1 + $0xb0] sm:$0xff]   ;;  %v1280_v31 = vld [vmem:[%s1754_s1 + $0xb8] sm:$0xff]   ;;  %v1288_v38 = vld [vmem:[%s1754_s1 + $0x108] sm:$0xff]  }
   0xd   :  { %1169 = vmatpush3.bf16.msra.mxu1 %v1260_v11  ;;  %1112 = vmatprep.subr.bf16.mxu0 %v1261_v12  ;;  %v1281_v32 = vld [vmem:[%s1755_s0] ss:$24 sps:$4 sm:$0xff]   ;;  %v1283_v33 = vld [vmem:[%s1755_s0 + $0x4] ss:$24 sps:$4 sm:$0xff]   ;;  %v1289_v39 = vld [vmem:[%s1755_s0 + $0x34] ss:$24 sps:$4 sm:$0xff]  }
   0xe   :  { %1170 = vmatprep.subr.bf16.mxu1 %v1262_v13  ;;  %669 = vmatprep.mubr.bf16.mxu0 %v1283_v33  ;;  %v1291_v40 = vld [vmem:[%s1755_s0 + $0x3c] ss:$24 sps:$4 sm:$0xff]   ;;  %v1293_v41 = vld [vmem:[%s1755_s0 + $0x30] ss:$24 sps:$4 sm:$0xff]   ;;  %v1299_v45 = vld [vmem:[%s1755_s0 + $0x6c] ss:$24 sps:$4 sm:$0xff]  }
   0xf   :  { %v1294_v42 = vld [vmem:[%s1755_s0 + $0x38] ss:$24 sps:$4 sm:$0xff]   ;;  %v1297_v44 = vld [vmem:[%s1755_s0 + $0x64] ss:$24 sps:$4 sm:$0xff]   ;;  %v1302_v48 = vld [vmem:[%s1755_s0 + $0x68] ss:$24 sps:$4 sm:$0xff]  }
  0x10   :  { %1113 = vmatpush3.bf16.msra.mxu0 %v1263_v14  ;;  %v1295_v43 = vld [vmem:[%s1754_s1 + $0x110] sm:$0xff]   ;;  %v1296_v46 = vld [vmem:[%s1754_s1 + $0x118] sm:$0xff]   ;;  %v1303_v49 = vld [vmem:[%s1754_s1 + $0x120] sm:$0xff]  }
  0x11   :  { %1171 = vmatpush3.bf16.msra.mxu1 %v1264_v15  ;;  %1114 = vmatprep.subr.bf16.mxu0 %v1265_v16  ;;  %v1301_v47 = vld [vmem:[%s1755_s0 + $0x60] ss:$24 sps:$4 sm:$0xff]   ;;  %v1304_v50 = vld [vmem:[%s1755_s0 + $0x94] ss:$24 sps:$4 sm:$0xff]   ;;  %v1309_v53 = vld [vmem:[%s1755_s0 + $0x90] ss:$24 sps:$4 sm:$0xff]  }
  0x12   :  { %1172 = vmatprep.subr.bf16.mxu1 %v1266_v17  ;;  %v1306_v51 = vld [vmem:[%s1755_s0 + $0x9c] ss:$24 sps:$4 sm:$0xff]   ;;  %v1308_v52 = vld [vmem:[%s1754_s1 + $0x128] sm:$0xff]   ;;  %v1310_v54 = vld [vmem:[%s1755_s0 + $0x98] ss:$24 sps:$4 sm:$0xff]  }
  0x13   :  { %v1311_v55 = vld [vmem:[%s1754_s1 + $0x130] sm:$0xff]   ;;  %v1312_v56 = vld [vmem:[%s1755_s0 + $0xc4] ss:$24 sps:$4 sm:$0xff]   ;;  %v1316_v59 = vld [vmem:[%s1755_s0 + $0xc0] ss:$24 sps:$4 sm:$0xff]  }
  0x14   :  { %1115 = vmatpush3.bf16.msra.mxu0 %v1267_v18  ;;  %v1314_v57 = vld [vmem:[%s1755_s0 + $0xcc] ss:$24 sps:$4 sm:$0xff]   ;;  %v1318_v58 = vld [vmem:[%s1754_s1 + $0x138] sm:$0xff]   ;;  %v1317_v60 = vld [vmem:[%s1755_s0 + $0xc8] ss:$24 sps:$4 sm:$0xff]  }
  0x15   :  { %1173 = vmatpush3.bf16.msra.mxu1 %v1268_v19  ;;  %1116 = vmatprep.subr.bf16.mxu0 %v1269_v20  ;;  %v1319_v61 = vld [vmem:[%s1754_s1 + $0x140] sm:$0xff]   ;;  %v1320_v62 = vld [vmem:[%s1755_s0 + $0xf4] ss:$24 sps:$4 sm:$0xff]   ;;  %v1324_v2 = vld [vmem:[%s1755_s0 + $0xf0] ss:$24 sps:$4 sm:$0xff]  }
  0x16   :  { %1174 = vmatprep.subr.bf16.mxu1 %v1270_v21  ;;  %v1322_v63 = vld [vmem:[%s1755_s0 + $0xfc] ss:$24 sps:$4 sm:$0xff]   ;;  %v1326_v0 = vld [vmem:[%s1754_s1 + $0x148] sm:$0xff]   ;;  %v51_v1 = vld [vmem:[%s1755_s0 + $0x120] sm:$0xff] }
  0x17   :  { %v52_v3 = vld [vmem:[%s1755_s0 + $0x128] sm:$0xff]  ;;  %v1325_v4 = vld [vmem:[%s1755_s0 + $0xf8] ss:$24 sps:$4 sm:$0xff]   ;;  %v1023_v6 = vcombine.high %v51_v1, %v51_v1  ;;  %v1022_v9 = vcombine.low %v51_v1, %v51_v1  ;;  %v1333_v11 = vld [vmem:[%s1754_s1 + $0x160] sm:$0xff]  }
  0x18   :  { %1117 = vmatpush3.bf16.msra.mxu0 %v1271_v22  ;;  %v1327_v5 = vld [vmem:[%s1754_s1 + $0x150] sm:$0xff]   ;;  %v1025_v7 = vcombine.high %v52_v3, %v52_v3  ;;  %v1332_v8 = vld [vmem:[%s1754_s1 + $0x158] sm:$0xff]   ;;  %v1024_v10 = vcombine.low %v52_v3, %v52_v3 }
  0x19   :  { %1175 = vmatpush3.bf16.msra.mxu1 %v1272_v23  ;;  %1118 = vmatprep.subr.bf16.mxu0 %v1273_v24  ;;  %v1336_v12 = vld [vmem:[%s1755_s0 + $0x14] ss:$24 sps:$4 sm:$0xff]   ;;  %v1334_v14 = vld [vmem:[%s1755_s0 + $0x10] ss:$24 sps:$4 sm:$0xff]   ;;  %v1340_v16 = vld [vmem:[%s1755_s0 + $0x44] ss:$24 sps:$4 sm:$0xff]  }
  0x1a   :  { %1176 = vmatprep.subr.bf16.mxu1 %v1274_v25  ;;  %v1339_v13 = vld [vmem:[%s1755_s0 + $0xd4] ss:$24 sps:$4 sm:$0xff]   ;;  %v1337_v15 = vld [vmem:[%s1755_s0 + $0xd0] ss:$24 sps:$4 sm:$0xff]   ;;  %v1342_v17 = vld [vmem:[%s1755_s0 + $0x104] ss:$24 sps:$4 sm:$0xff]  }
  0x1b   :  { %v53_v18 = vld [vmem:[%s1755_s0 + $0x130] sm:$0xff]  ;;  %v1344_v19 = vld [vmem:[%s1755_s0 + $0x40] ss:$24 sps:$4 sm:$0xff]   ;;  %v1351_v25 = vld [vmem:[%s1755_s0 + $0xa4] ss:$24 sps:$4 sm:$0xff]  }
  0x1c   :  { %1119 = vmatpush3.bf16.msra.mxu0 %v1275_v26  ;;  %v1345_v20 = vld [vmem:[%s1755_s0 + $0x100] ss:$24 sps:$4 sm:$0xff]   ;;  %v1346_v21 = vld [vmem:[%s1755_s0 + $0x74] ss:$24 sps:$4 sm:$0xff]   ;;  %v1027_v22 = vcombine.high %v53_v18, %v53_v18  ;;  %v1349_v23 = vld [vmem:[%s1755_s0 + $0x70] ss:$24 sps:$4 sm:$0xff]   ;;  %v1026_v24 = vcombine.low %v53_v18, %v53_v18 }
  0x1d   :  { %1177 = vmatpush3.bf16.msra.mxu1 %v1276_v27  ;;  %1120 = vmatprep.subr.bf16.mxu0 %v1277_v28  ;;  %v1353_v26 = vld [vmem:[%s1755_s0 + $0xa0] ss:$24 sps:$4 sm:$0xff]  }
  0x1e   :  { %1178 = vmatprep.subr.bf16.mxu1 %v1278_v29  ;;  %v1663_v28 = vld [vmem:[%s1756_s2] ss:$0 sm:$0xff] }
  0x20   :  { %1121 = vmatpush3.bf16.msra.mxu0 %v1279_v30 }
  0x21   :  { %1179 = vmatpush3.bf16.msra.mxu1 %v1280_v31  ;;  %813 = vmatprep.subr.bf16.mxu0 %v1354_v34 }
  0x22   :  { %1222 = vmatprep.subr.bf16.mxu1 %v1354_v34 }
  0x23   :  { %670 = vmatmul.mubr.bf16.vlgmr.msra.gmra.mrb[0].mxu0 %v1281_v32 }
  0x24   :  { %758 = vmatmul.mubr.bf16.vlgmr.msra.gmra.mrb[0].mxu1 %v1284_v35  ;;  %814 = vmatpush1.bf16.msra.mxu0 %v1287_v37 }
  0x25   :  { %1235 = vmatpush1.bf16.msra.mxu1 %v1287_v37  ;;  %815 = vmatprep.subr.bf16.mxu0 %v1354_v34 }
  0x26   :  { %677 = vmatprep.mubr.bf16.mxu0 %v1289_v39  ;;  %1223 = vmatprep.subr.bf16.mxu1 %v1354_v34 }
  0x27   :  { %765 = vmatprep.mubr.bf16.mxu1 %v1291_v40 }
  0x28   :  { %816 = vmatpush1.bf16.msra.mxu0 %v1288_v38 }
  0x29   :  { %1236 = vmatpush1.bf16.msra.mxu1 %v1288_v38  ;;  %817 = vmatprep.subr.bf16.mxu0 %v1354_v34 }
  0x2a   :  { %1224 = vmatprep.subr.bf16.mxu1 %v1354_v34 }
  0x2b   :  { %678 = vmatmul.mubr.bf16.gmra.mrb[4].mxu0 %v1293_v41 }
  0x2c   :  { %766 = vmatmul.mubr.bf16.gmra.mrb[4].mxu1 %v1294_v42  ;;  %818 = vmatpush1.bf16.msra.mxu0 %v1295_v43 }
  0x2d   :  { %1237 = vmatpush1.bf16.msra.mxu1 %v1295_v43  ;;  %819 = vmatprep.subr.bf16.mxu0 %v1354_v34 }
  0x2e   :  { %685 = vmatprep.mubr.bf16.mxu0 %v1297_v44  ;;  %773 = vmatprep.mubr.bf16.mxu1 %v1299_v45 }
  0x2f   :  { %1225 = vmatprep.subr.bf16.mxu1 %v1354_v34 }
  0x30   :  { %820 = vmatpush1.bf16.msra.mxu0 %v1296_v46 }
  0x31   :  { %1238 = vmatpush1.bf16.msra.mxu1 %v1296_v46  ;;  %821 = vmatprep.subr.bf16.mxu0 %v1354_v34 }
  0x32   :  { %1226 = vmatprep.subr.bf16.mxu1 %v1354_v34 }
  0x33   :  { %686 = vmatmul.mubr.bf16.gmra.mrb[8].mxu0 %v1301_v47 }
  0x34   :  { %774 = vmatmul.mubr.bf16.gmra.mrb[8].mxu1 %v1302_v48  ;;  %822 = vmatpush1.bf16.msra.mxu0 %v1303_v49 }
  0x35   :  { %1239 = vmatpush1.bf16.msra.mxu1 %v1303_v49  ;;  %823 = vmatprep.subr.bf16.mxu0 %v1354_v34 }
  0x36   :  { %693 = vmatprep.mubr.bf16.mxu0 %v1304_v50  ;;  %781 = vmatprep.mubr.bf16.mxu1 %v1306_v51 }
  0x37   :  { %1227 = vmatprep.subr.bf16.mxu1 %v1354_v34 }
  0x38   :  { %824 = vmatpush1.bf16.msra.mxu0 %v1308_v52 }
  0x39   :  { %1240 = vmatpush1.bf16.msra.mxu1 %v1308_v52  ;;  %825 = vmatprep.subr.bf16.mxu0 %v1354_v34 }
  0x3a   :  { %1228 = vmatprep.subr.bf16.mxu1 %v1354_v34 }
  0x3b   :  { %694 = vmatmul.mubr.bf16.gmra.mrb[12].mxu0 %v1309_v53 }
  0x3c   :  { %782 = vmatmul.mubr.bf16.gmra.mrb[12].mxu1 %v1310_v54  ;;  %826 = vmatpush1.bf16.msra.mxu0 %v1311_v55 }
  0x3d   :  { %1241 = vmatpush1.bf16.msra.mxu1 %v1311_v55  ;;  %701 = vmatprep.mubr.bf16.mxu0 %v1312_v56 }
  0x3e   :  { %789 = vmatprep.mubr.bf16.mxu1 %v1314_v57  ;;  %827 = vmatprep.subr.bf16.mxu0 %v1354_v34 }
  0x3f   :  { %1229 = vmatprep.subr.bf16.mxu1 %v1354_v34 }
  0x40   :  { %828 = vmatpush1.bf16.msra.mxu0 %v1318_v58 }
  0x41   :  { %1242 = vmatpush1.bf16.msra.mxu1 %v1318_v58  ;;  %829 = vmatprep.subr.bf16.mxu0 %v1354_v34 }
  0x42   :  { %1230 = vmatprep.subr.bf16.mxu1 %v1354_v34 }
  0x43   :  { %702 = vmatmul.mubr.bf16.gmra.mrb[16].mxu0 %v1316_v59 }
  0x44   :  { %790 = vmatmul.mubr.bf16.gmra.mrb[16].mxu1 %v1317_v60  ;;  %830 = vmatpush1.bf16.msra.mxu0 %v1319_v61 }
  0x45   :  { %1243 = vmatpush1.bf16.msra.mxu1 %v1319_v61  ;;  %709 = vmatprep.mubr.bf16.mxu0 %v1320_v62 }
  0x46   :  { %797 = vmatprep.mubr.bf16.mxu1 %v1322_v63  ;;  %831 = vmatprep.subr.bf16.mxu0 %v1354_v34 }
  0x47   :  { %1231 = vmatprep.subr.bf16.mxu1 %v1354_v34 }
  0x48   :  { %832 = vmatpush1.bf16.msra.mxu0 %v1326_v0 }
  0x49   :  { %1244 = vmatpush1.bf16.msra.mxu1 %v1326_v0  ;;  %833 = vmatprep.subr.bf16.mxu0 %v1354_v34 }
  0x4a   :  { %1232 = vmatprep.subr.bf16.mxu1 %v1354_v34 }
  0x4b   :  { %710 = vmatmul.mubr.bf16.gmra.mrb[20].mxu0 %v1324_v2 }
  0x4c   :  { %798 = vmatmul.mubr.bf16.gmra.mrb[20].mxu1 %v1325_v4  ;;  %834 = vmatpush1.bf16.msra.mxu0 %v1327_v5 }
  0x4d   :  { %1245 = vmatpush1.bf16.msra.mxu1 %v1327_v5  ;;  %717 = vmatprep.mubr.bf16.mxu0 %v1023_v6 }
  0x4e   :  { %805 = vmatprep.mubr.bf16.mxu1 %v1025_v7  ;;  %835 = vmatprep.subr.bf16.mxu0 %v1354_v34 }
  0x4f   :  { %1233 = vmatprep.subr.bf16.mxu1 %v1354_v34 }
  0x50   :  { %836 = vmatpush1.bf16.msra.mxu0 %v1332_v8 }
  0x51   :  { %1246 = vmatpush1.bf16.msra.mxu1 %v1332_v8  ;;  %837 = vmatprep.subr.bf16.mxu0 %v1354_v34 }
  0x52   :  { %1234 = vmatprep.subr.bf16.mxu1 %v1354_v34 }
  0x53   :  { %718 = vmatmul.mubr.bf16.gmra.mrb[24].mxu0 %v1022_v9 }
  0x54   :  { %806 = vmatmul.mubr.bf16.gmra.mrb[24].mxu1 %v1024_v10  ;;  %838 = vmatpush1.bf16.msra.mxu0 %v1333_v11 }
  0x55   :  { %1247 = vmatpush1.bf16.msra.mxu1 %v1333_v11  ;;  %1073 = vmatprep.mubr.msk.bf16.mxu0 %vm615_vm0, %v1336_v12 }
  0x56   :  { %1077 = vmatprep.mubr.msk.bf16.mxu1 %vm615_vm0, %v1339_v13 }
  0x5b   :  { %846 = vmatmul.mubr.bf16.vlgmr.msra.gmra.mrb[28].mxu0 %v1334_v14 }
  0x5c   :  { %878 = vmatmul.mubr.bf16.vlgmr.msra.gmra.mrb[28].mxu1 %v1337_v15  ;;  %1074 = vmatprep.mubr.msk.bf16.mxu0 %vm615_vm0, %v1340_v16 }
  0x5d   :  { %1078 = vmatprep.mubr.msk.bf16.mxu1 %vm615_vm0, %v1342_v17 }
  0x63   :  { %854 = vmatmul.mubr.bf16.gmra.mrb[32].mxu0 %v1344_v19 }
  0x64   :  { %886 = vmatmul.mubr.bf16.gmra.mrb[32].mxu1 %v1345_v20  ;;  %1075 = vmatprep.mubr.msk.bf16.mxu0 %vm615_vm0, %v1346_v21 }
  0x65   :  { %1079 = vmatprep.mubr.msk.bf16.mxu1 %vm615_vm0, %v1027_v22 }
  0x6b   :  { %862 = vmatmul.mubr.bf16.gmra.mrb[36].mxu0 %v1349_v23 }
  0x6c   :  { %894 = vmatmul.mubr.bf16.gmra.mrb[36].mxu1 %v1026_v24  ;;  %1076 = vmatprep.mubr.msk.bf16.mxu0 %vm615_vm0, %v1351_v25 }
  0x73   :  { %870 = vmatmul.mubr.bf16.gmra.mrb[40].mxu0 %v1353_v26 }
  0xf6   :  { %v1122_v27 = vpop.f32.mrb[0].mxu0 }
  0xf7   :  { %v1123_v29 = vpop.f32.mrb[1].mxu0  ;;  %v1180_v30 = vpop.f32.mrb[0].mxu1 }
  0xf8   :  { %v1124_v31 = vadd.f32 %v1123_v29, %v1122_v27  ;;  %v1125_v32 = vpop.f32.mrb[2].mxu0  ;;  %v1181_v33 = vpop.f32.mrb[1].mxu1 }
  0xf9   :  { %v1126_v34 = vpop.f32.mrb[3].mxu0  ;;  %v1182_v35 = vadd.f32 %v1181_v33, %v1180_v30  ;;  %v1183_v36 = vpop.f32.mrb[2].mxu1 }
  0xfa   :  { %v672_v37 = vadd.f32 %v1124_v31, %v1663_v28  ;;  %v1127_v38 = vadd.f32 %v1126_v34, %v1125_v32  ;;  %v1184_v39 = vpop.f32.mrb[3].mxu1 }
  0xfb   :  { %v1185_v40 = vadd.f32 %v1184_v39, %v1183_v36 }
  0xfc   :  { %v675_v41 = vadd.f32 %v1127_v38, %v1663_v28  ;;  %v1667_v42 = vadd.f32 %v1182_v35, %v672_v37 }
  0xfe   :  { %v1128_v43 = vpop.f32.mrb[4].mxu0  ;;  %v1669_v44 = vadd.f32 %v1185_v40, %v675_v41 }
  0xff   :  { %v1129_v45 = vpop.f32.mrb[5].mxu0  ;;  %v1186_v46 = vpop.f32.mrb[4].mxu1 }
 0x100   :  { %v1130_v47 = vadd.f32 %v1129_v45, %v1128_v43  ;;  %v1131_v48 = vpop.f32.mrb[6].mxu0  ;;  %v1187_v49 = vpop.f32.mrb[5].mxu1 }
 0x101   :  { %v1132_v50 = vpop.f32.mrb[7].mxu0  ;;  %v1188_v51 = vadd.f32 %v1187_v49, %v1186_v46  ;;  %v1189_v52 = vpop.f32.mrb[6].mxu1 }
 0x102   :  { %v680_v53 = vadd.f32 %v1130_v47, %v1663_v28  ;;  %v1133_v54 = vadd.f32 %v1132_v50, %v1131_v48  ;;  %v1190_v55 = vpop.f32.mrb[7].mxu1 }
 0x103   :  { %v1191_v56 = vadd.f32 %v1190_v55, %v1189_v52 }
 0x104   :  { %v683_v57 = vadd.f32 %v1133_v54, %v1663_v28  ;;  %v1673_v58 = vadd.f32 %v1188_v51, %v680_v53 }
 0x106   :  { %v1134_v59 = vpop.f32.mrb[8].mxu0  ;;  %v1675_v60 = vadd.f32 %v1191_v56, %v683_v57 }
 0x107   :  { %v1135_v61 = vpop.f32.mrb[9].mxu0  ;;  %v1192_v62 = vpop.f32.mrb[8].mxu1 }
 0x108   :  { %v1136_v63 = vadd.f32 %v1135_v61, %v1134_v59  ;;  %v1137_v0 = vpop.f32.mrb[10].mxu0  ;;  %v1193_v1 = vpop.f32.mrb[9].mxu1 }
 0x109   :  { %v1138_v2 = vpop.f32.mrb[11].mxu0  ;;  %v1194_v3 = vadd.f32 %v1193_v1, %v1192_v62  ;;  %v1195_v4 = vpop.f32.mrb[10].mxu1 }
 0x10a   :  { %v688_v5 = vadd.f32 %v1136_v63, %v1663_v28  ;;  %v1139_v6 = vadd.f32 %v1138_v2, %v1137_v0  ;;  %v1196_v7 = vpop.f32.mrb[11].mxu1 }
 0x10b   :  { %v1197_v8 = vadd.f32 %v1196_v7, %v1195_v4 }
 0x10c   :  { %v691_v9 = vadd.f32 %v1139_v6, %v1663_v28  ;;  %v1679_v10 = vadd.f32 %v1194_v3, %v688_v5 }
 0x10e   :  { %v1140_v11 = vpop.f32.mrb[12].mxu0  ;;  %v1681_v12 = vadd.f32 %v1197_v8, %v691_v9 }
 0x10f   :  { %v1141_v13 = vpop.f32.mrb[13].mxu0  ;;  %v1198_v14 = vpop.f32.mrb[12].mxu1 }
 0x110   :  { %v1142_v15 = vadd.f32 %v1141_v13, %v1140_v11  ;;  %v1143_v16 = vpop.f32.mrb[14].mxu0  ;;  %v1199_v17 = vpop.f32.mrb[13].mxu1 }
 0x111   :  { %v1144_v18 = vpop.f32.mrb[15].mxu0  ;;  %v1200_v19 = vadd.f32 %v1199_v17, %v1198_v14  ;;  %v1201_v20 = vpop.f32.mrb[14].mxu1 }
 0x112   :  { %v696_v21 = vadd.f32 %v1142_v15, %v1663_v28  ;;  %v1145_v22 = vadd.f32 %v1144_v18, %v1143_v16  ;;  %v1202_v23 = vpop.f32.mrb[15].mxu1 }
 0x113   :  { %v1203_v24 = vadd.f32 %v1202_v23, %v1201_v20 }
 0x114   :  { %v699_v25 = vadd.f32 %v1145_v22, %v1663_v28  ;;  %v1685_v26 = vadd.f32 %v1200_v19, %v696_v21 }
 0x116   :  { %v1146_v27 = vpop.f32.mrb[16].mxu0  ;;  %v1687_v29 = vadd.f32 %v1203_v24, %v699_v25 }
 0x117   :  { %v1147_v30 = vpop.f32.mrb[17].mxu0  ;;  %v1204_v31 = vpop.f32.mrb[16].mxu1 }
 0x118   :  { %v1148_v32 = vadd.f32 %v1147_v30, %v1146_v27  ;;  %v1149_v33 = vpop.f32.mrb[18].mxu0  ;;  %v1205_v34 = vpop.f32.mrb[17].mxu1 }
 0x119   :  { %v1150_v35 = vpop.f32.mrb[19].mxu0  ;;  %v1206_v36 = vadd.f32 %v1205_v34, %v1204_v31  ;;  %v1207_v37 = vpop.f32.mrb[18].mxu1 }
 0x11a   :  { %v704_v38 = vadd.f32 %v1148_v32, %v1663_v28  ;;  %v1151_v39 = vadd.f32 %v1150_v35, %v1149_v33  ;;  %v1208_v40 = vpop.f32.mrb[19].mxu1 }
 0x11b   :  { %v1209_v41 = vadd.f32 %v1208_v40, %v1207_v37 }
 0x11c   :  { %v707_v43 = vadd.f32 %v1151_v39, %v1663_v28  ;;  %v792_v45 = vadd.f32 %v1206_v36, %v704_v38 }
 0x11e   :  { %v1152_v46 = vpop.f32.mrb[20].mxu0  ;;  %v795_v47 = vadd.f32 %v1209_v41, %v707_v43 }
 0x11f   :  { %v1153_v48 = vpop.f32.mrb[21].mxu0  ;;  %v1210_v49 = vpop.f32.mrb[20].mxu1 }
 0x120   :  { %v1154_v50 = vadd.f32 %v1153_v48, %v1152_v46  ;;  %v1155_v51 = vpop.f32.mrb[22].mxu0  ;;  %v1211_v52 = vpop.f32.mrb[21].mxu1 }
 0x121   :  { %v1156_v53 = vpop.f32.mrb[23].mxu0  ;;  %v1212_v54 = vadd.f32 %v1211_v52, %v1210_v49  ;;  %v1213_v55 = vpop.f32.mrb[22].mxu1 }
 0x122   :  { %v712_v56 = vadd.f32 %v1154_v50, %v1663_v28  ;;  %v1157_v57 = vadd.f32 %v1156_v53, %v1155_v51  ;;  %v1214_v59 = vpop.f32.mrb[23].mxu1 }
 0x123   :  { %v1215_v61 = vadd.f32 %v1214_v59, %v1213_v55 }
 0x124   :  { %v715_v62 = vadd.f32 %v1157_v57, %v1663_v28  ;;  %v800_v63 = vadd.f32 %v1212_v54, %v712_v56 }
 0x126   :  { %v1158_v0 = vpop.f32.mrb[24].mxu0  ;;  %v803_v1 = vadd.f32 %v1215_v61, %v715_v62 }
 0x127   :  { %v1159_v2 = vpop.f32.mrb[25].mxu0  ;;  %v1216_v3 = vpop.f32.mrb[24].mxu1 }
 0x128   :  { %v1160_v4 = vadd.f32 %v1159_v2, %v1158_v0  ;;  %v1161_v5 = vpop.f32.mrb[26].mxu0  ;;  %v1217_v6 = vpop.f32.mrb[25].mxu1 }
 0x129   :  { %v1162_v7 = vpop.f32.mrb[27].mxu0  ;;  %v1218_v8 = vadd.f32 %v1217_v6, %v1216_v3  ;;  %v1219_v9 = vpop.f32.mrb[26].mxu1 }
 0x12a   :  { %v720_v11 = vadd.f32 %v1160_v4, %v1663_v28  ;;  %v1220_v13 = vpop.f32.mrb[27].mxu1 }
 0x12c   :  { %v808_v14 = vadd.f32 %v1218_v8, %v720_v11 }
 0x12e   :  { %v847_v15 = vpop.f32.mrb[28].mxu0 }
 0x12f   :  { %v848_v16 = vadd.f32 %v847_v15, %v1667_v42  ;;  %v879_v17 = vpop.f32.mrb[28].mxu1  ;;  %v849_v18 = vpop.f32.mrb[29].mxu0 }
 0x130   :  { %v880_v19 = vadd.f32 %v879_v17, %v792_v45  ;;  %v881_v20 = vpop.f32.mrb[29].mxu1  ;;  %v850_v21 = vpop.f32.mrb[30].mxu0 }
 0x131   :  { %v901_v22 = vmax.f32 %v848_v16, 0.0  ;;  %v851_v23 = vadd.f32 %v850_v21, %v1669_v44  ;;  %v882_v24 = vpop.f32.mrb[30].mxu1  ;;  %v852_v25 = vpop.f32.mrb[31].mxu0 }
 0x132   :  { %v909_v27 = vmax.f32 %v880_v19, 0.0  ;;  %v883_v30 = vadd.f32 %v882_v24, %v795_v47  ;;  %v884_v31 = vpop.f32.mrb[31].mxu1 }
 0x133   :  { %v1093_v28 = vpack.c.bf16 %v901_v22, %v901_v22  ;;  %v902_v32 = vmax.f32 %v851_v23, 0.0 }
 0x134   :  { %v1101_v33 = vpack.c.bf16 %v909_v27, %v909_v27  ;;  %v910_v34 = vmax.f32 %v883_v30, 0.0 }
 0x135   :  { %968 = vst.msk [vmem:[%s1757_s3] sm:$0xf] %vm967_vm1, %v1093_v28  ;;  %v1094_v42 = vpack.c.bf16 %v902_v32, %v902_v32 }
 0x136   :  { %976 = vst.msk [vmem:[%s1757_s3 + $0x20] sm:$0xf] %vm967_vm1, %v1101_v33  ;;  %v1102_v44 = vpack.c.bf16 %v910_v34, %v910_v34  ;;  %v855_v35 = vpop.f32.mrb[32].mxu0 }
 0x137   :  { %969 = vst.msk [vmem:[%s1757_s3 + $0x4] sm:$0xf] %vm967_vm1, %v1094_v42  ;;  %v856_v36 = vadd.f32 %v855_v35, %v1673_v58  ;;  %v887_v37 = vpop.f32.mrb[32].mxu1  ;;  %v857_v38 = vpop.f32.mrb[33].mxu0 }
 0x138   :  { %977 = vst.msk [vmem:[%s1757_s3 + $0x24] sm:$0xf] %vm967_vm1, %v1102_v44  ;;  %v888_v39 = vadd.f32 %v887_v37, %v800_v63  ;;  %v889_v40 = vpop.f32.mrb[33].mxu1  ;;  %v858_v41 = vpop.f32.mrb[34].mxu0 }
 0x139   :  { %v903_v43 = vmax.f32 %v856_v36, 0.0  ;;  %v859_v45 = vadd.f32 %v858_v41, %v1675_v60  ;;  %v890_v46 = vpop.f32.mrb[34].mxu1  ;;  %v860_v47 = vpop.f32.mrb[35].mxu0 }
 0x13a   :  { %v911_v48 = vmax.f32 %v888_v39, 0.0  ;;  %v891_v49 = vadd.f32 %v890_v46, %v803_v1  ;;  %v892_v50 = vpop.f32.mrb[35].mxu1 }
 0x13b   :  { %v1095_v51 = vpack.c.bf16 %v903_v43, %v903_v43  ;;  %v904_v58 = vmax.f32 %v859_v45, 0.0 }
 0x13c   :  { %v1103_v52 = vpack.c.bf16 %v911_v48, %v911_v48  ;;  %v912_v53 = vmax.f32 %v891_v49, 0.0 }
 0x13d   :  { %970 = vst.msk [vmem:[%s1757_s3 + $0x8] sm:$0xf] %vm967_vm1, %v1095_v51  ;;  %v1096_v54 = vpack.c.bf16 %v904_v58, %v904_v58 }
 0x13e   :  { %978 = vst.msk [vmem:[%s1757_s3 + $0x28] sm:$0xf] %vm967_vm1, %v1103_v52  ;;  %v1104_v60 = vpack.c.bf16 %v912_v53, %v912_v53  ;;  %v863_v55 = vpop.f32.mrb[36].mxu0 }
 0x13f   :  { %971 = vst.msk [vmem:[%s1757_s3 + $0xc] sm:$0xf] %vm967_vm1, %v1096_v54  ;;  %v864_v56 = vadd.f32 %v863_v55, %v1679_v10  ;;  %v895_v57 = vpop.f32.mrb[36].mxu1  ;;  %v865_v59 = vpop.f32.mrb[37].mxu0 }
 0x140   :  { %979 = vst.msk [vmem:[%s1757_s3 + $0x2c] sm:$0xf] %vm967_vm1, %v1104_v60  ;;  %v896_v61 = vadd.f32 %v895_v57, %v808_v14  ;;  %v866_v62 = vpop.f32.mrb[38].mxu0  ;;  %v897_v63 = vpop.f32.mrb[37].mxu1 }
 0x141   :  { %v905_v0 = vmax.f32 %v864_v56, 0.0  ;;  %v867_v1 = vadd.f32 %v866_v62, %v1681_v12  ;;  %v868_v2 = vpop.f32.mrb[39].mxu0  ;;  %v898_v3 = vpop.f32.mrb[38].mxu1 }
 0x142   :  { %v913_v4 = vmax.f32 %v896_v61, 0.0  ;;  %v899_v5 = vpop.f32.mrb[39].mxu1 }
 0x143   :  { %v1097_v6 = vpack.c.bf16 %v905_v0, %v905_v0  ;;  %v906_v7 = vmax.f32 %v867_v1, 0.0 }
 0x144   :  { %v1105_v10 = vpack.c.bf16 %v913_v4, %v913_v4 }
 0x145   :  { %972 = vst.msk [vmem:[%s1757_s3 + $0x10] sm:$0xf] %vm967_vm1, %v1097_v6  ;;  %v1098_v8 = vpack.c.bf16 %v906_v7, %v906_v7 }
 0x146   :  { %980 = vst.msk [vmem:[%s1757_s3 + $0x30] sm:$0xf] %vm967_vm1, %v1105_v10  ;;  %v871_v9 = vpop.f32.mrb[40].mxu0 }
 0x147   :  { %973 = vst.msk [vmem:[%s1757_s3 + $0x14] sm:$0xf] %vm967_vm1, %v1098_v8  ;;  %v872_v12 = vadd.f32 %v871_v9, %v1685_v26  ;;  %v873_v11 = vpop.f32.mrb[41].mxu0 }
 0x148   :  { %v874_v13 = vpop.f32.mrb[42].mxu0 }
 0x149   :  { %v907_v14 = vmax.f32 %v872_v12, 0.0  ;;  %v875_v15 = vadd.f32 %v874_v13, %v1687_v29  ;;  %v876_v16 = vpop.f32.mrb[43].mxu0 }
 0x14b   :  { %v1099_v17 = vpack.c.bf16 %v907_v14, %v907_v14  ;;  %v908_v18 = vmax.f32 %v875_v15, 0.0 }
 0x14d   :  { %974 = vst.msk [vmem:[%s1757_s3 + $0x18] sm:$0xf] %vm967_vm1, %v1099_v17  ;;  %v1100_v19 = vpack.c.bf16 %v908_v18, %v908_v18 }
 0x14f   :  { %975 = vst.msk [vmem:[%s1757_s3 + $0x1c] sm:$0xf] %vm967_vm1, %v1100_v19 }

// kernel: hybridsn_forward.7
= control target key start
LH: loop header
LB: loop body
LE: loop exit
PB: predicated region body
PF: predicated region fallthrough
CT: control target
= control target key end

     0   :  { %vm611_vm0 = vcmask 785408   ;;  %s1562_s1 = inlined_call_operand.vmem [shape: bf16[864,128], index: 1, kind: input, shape index: {}]   ;;  %s1563_s0 = inlined_call_operand.vmem [shape: bf16[56,864], index: 0, kind: input, shape index: {}]   ;;  %s1564_s2 = inlined_call_operand.vmem [shape: f32[1,128], index: 2, kind: input, shape index: {}]   ;;  %s1565_s3 = inlined_call_operand.vmem [shape: bf16[56,128], index: 3, kind: output, shape index: {}]  }
   0x1   :  { %v1195_v0 = vld [vmem:[%s1562_s1 + $0x40] sm:$0xff]   ;;  %v1199_v4 = vld [vmem:[%s1562_s1 + $0x48] sm:$0xff]   ;;  %v1203_v8 = vld [vmem:[%s1562_s1 + $0x50] sm:$0xff]  }
   0x2   :  { %v1196_v1 = vld [vmem:[%s1562_s1] sm:$0xff]   ;;  %1045 = vmatprep.subr.bf16.mxu0 %v1195_v0  ;;  %v1200_v5 = vld [vmem:[%s1562_s1 + $0x8] sm:$0xff]   ;;  %v1204_v9 = vld [vmem:[%s1562_s1 + $0x10] sm:$0xff]  }
   0x3   :  { %v1197_v2 = vld [vmem:[%s1562_s1 + $0xc0] sm:$0xff]   ;;  %1046 = vmatpush3.bf16.msra.mxu0 %v1196_v1  ;;  %v1201_v6 = vld [vmem:[%s1562_s1 + $0xc8] sm:$0xff]   ;;  %v1205_v10 = vld [vmem:[%s1562_s1 + $0xd0] sm:$0xff]  }
   0x4   :  { %v1198_v3 = vld [vmem:[%s1562_s1 + $0x80] sm:$0xff]   ;;  %1085 = vmatprep.subr.bf16.mxu1 %v1197_v2  ;;  %1047 = vmatprep.subr.bf16.mxu0 %v1199_v4  ;;  %v1202_v7 = vld [vmem:[%s1562_s1 + $0x88] sm:$0xff]   ;;  %v1206_v11 = vld [vmem:[%s1562_s1 + $0x90] sm:$0xff]  }
   0x5   :  { %1086 = vmatpush3.bf16.msra.mxu1 %v1198_v3  ;;  %v1207_v12 = vld [vmem:[%s1562_s1 + $0x58] sm:$0xff]   ;;  %v1211_v16 = vld [vmem:[%s1562_s1 + $0x60] sm:$0xff]   ;;  %v1215_v20 = vld [vmem:[%s1562_s1 + $0x68] sm:$0xff]  }
   0x6   :  { %1087 = vmatprep.subr.bf16.mxu1 %v1201_v6  ;;  %v1208_v13 = vld [vmem:[%s1562_s1 + $0x18] sm:$0xff]   ;;  %v1212_v17 = vld [vmem:[%s1562_s1 + $0x20] sm:$0xff]   ;;  %v1216_v21 = vld [vmem:[%s1562_s1 + $0x28] sm:$0xff]  }
   0x7   :  { %1048 = vmatpush3.bf16.msra.mxu0 %v1200_v5  ;;  %v1209_v14 = vld [vmem:[%s1562_s1 + $0xd8] sm:$0xff]   ;;  %v1213_v18 = vld [vmem:[%s1562_s1 + $0xe0] sm:$0xff]   ;;  %v1217_v22 = vld [vmem:[%s1562_s1 + $0xe8] sm:$0xff]  }
   0x8   :  { %1049 = vmatprep.subr.bf16.mxu0 %v1203_v8  ;;  %v1210_v15 = vld [vmem:[%s1562_s1 + $0x98] sm:$0xff]   ;;  %v1214_v19 = vld [vmem:[%s1562_s1 + $0xa0] sm:$0xff]   ;;  %v1218_v23 = vld [vmem:[%s1562_s1 + $0xa8] sm:$0xff]  }
   0x9   :  { %1088 = vmatpush3.bf16.msra.mxu1 %v1202_v7  ;;  %v1219_v24 = vld [vmem:[%s1562_s1 + $0x70] sm:$0xff]   ;;  %v1223_v28 = vld [vmem:[%s1562_s1 + $0x78] sm:$0xff]   ;;  %v1228_v32 = vld [vmem:[%s1563_s0 + $0x4] ss:$28 sps:$4 sm:$0xff]  }
   0xa   :  { %1089 = vmatprep.subr.bf16.mxu1 %v1205_v10  ;;  %v1220_v25 = vld [vmem:[%s1562_s1 + $0x30] sm:$0xff]   ;;  %v1224_v29 = vld [vmem:[%s1562_s1 + $0x38] sm:$0xff]   ;;  %656 = vmatprep.mubr.bf16.mxu0 %v1228_v32  ;;  %v1230_v34 = vld [vmem:[%s1562_s1 + $0x140] sm:$0xff]  }
   0xb   :  { %1050 = vmatpush3.bf16.msra.mxu0 %v1204_v9  ;;  %v1221_v26 = vld [vmem:[%s1562_s1 + $0xf0] sm:$0xff]   ;;  %v1225_v30 = vld [vmem:[%s1562_s1 + $0xf8] sm:$0xff]   ;;  %v1231_v35 = vld [vmem:[%s1563_s0 + $0x8] ss:$28 sps:$4 sm:$0xff]  }
   0xc   :  { %1051 = vmatprep.subr.bf16.mxu0 %v1207_v12  ;;  %v1222_v27 = vld [vmem:[%s1562_s1 + $0xb0] sm:$0xff]   ;;  %v1226_v31 = vld [vmem:[%s1563_s0] ss:$28 sps:$4 sm:$0xff]   ;;  %v1233_v36 = vld [vmem:[%s1563_s0 + $0xc] ss:$28 sps:$4 sm:$0xff]  }
   0xd   :  { %1090 = vmatpush3.bf16.msra.mxu1 %v1206_v11  ;;  %v1229_v33 = vld [vmem:[%s1562_s1 + $0xb8] sm:$0xff]   ;;  %v1234_v37 = vld [vmem:[%s1562_s1 + $0x100] sm:$0xff]   ;;  %720 = vmatprep.mubr.bf16.mxu1 %v1233_v36  ;;  %v1235_v38 = vld [vmem:[%s1562_s1 + $0x148] sm:$0xff]  }
   0xe   :  { %1091 = vmatprep.subr.bf16.mxu1 %v1209_v14  ;;  %v1236_v39 = vld [vmem:[%s1562_s1 + $0x108] sm:$0xff]   ;;  %v1237_v40 = vld [vmem:[%s1563_s0 + $0x3c] ss:$28 sps:$4 sm:$0xff]   ;;  %v1240_v42 = vld [vmem:[%s1562_s1 + $0x150] sm:$0xff]  }
   0xf   :  { %1052 = vmatpush3.bf16.msra.mxu0 %v1208_v13  ;;  %v1239_v41 = vld [vmem:[%s1563_s0 + $0x38] ss:$28 sps:$4 sm:$0xff]   ;;  %v1241_v43 = vld [vmem:[%s1563_s0 + $0x44] ss:$28 sps:$4 sm:$0xff]   ;;  %v1250_v50 = vld [vmem:[%s1563_s0 + $0x70] ss:$28 sps:$4 sm:$0xff]  }
  0x10   :  { %1053 = vmatprep.subr.bf16.mxu0 %v1211_v16  ;;  %v1243_v44 = vld [vmem:[%s1562_s1 + $0x110] sm:$0xff]   ;;  %v1244_v45 = vld [vmem:[%s1563_s0 + $0x40] ss:$28 sps:$4 sm:$0xff]   ;;  %v1252_v52 = vld [vmem:[%s1562_s1 + $0x188] sm:$0xff]  }
  0x11   :  { %1092 = vmatpush3.bf16.msra.mxu1 %v1210_v15  ;;  %v1245_v46 = vld [vmem:[%s1562_s1 + $0x158] sm:$0xff]   ;;  %v1246_v47 = vld [vmem:[%s1562_s1 + $0x180] sm:$0xff]   ;;  %v1248_v49 = vld [vmem:[%s1563_s0 + $0x74] ss:$28 sps:$4 sm:$0xff]  }
  0x12   :  { %1093 = vmatprep.subr.bf16.mxu1 %v1213_v18  ;;  %v1247_v48 = vld [vmem:[%s1562_s1 + $0x118] sm:$0xff]   ;;  %v1251_v51 = vld [vmem:[%s1562_s1 + $0x160] sm:$0xff]   ;;  %v1257_v56 = vld [vmem:[%s1562_s1 + $0x168] sm:$0xff]  }
  0x13   :  { %1054 = vmatpush3.bf16.msra.mxu0 %v1212_v17  ;;  %v1253_v53 = vld [vmem:[%s1563_s0 + $0x7c] ss:$28 sps:$4 sm:$0xff]   ;;  %v1255_v54 = vld [vmem:[%s1562_s1 + $0x120] sm:$0xff]   ;;  %v1258_v57 = vld [vmem:[%s1562_s1 + $0x190] sm:$0xff]  }
  0x14   :  { %1055 = vmatprep.subr.bf16.mxu0 %v1215_v20  ;;  %v1256_v55 = vld [vmem:[%s1563_s0 + $0x78] ss:$28 sps:$4 sm:$0xff]   ;;  %v1259_v58 = vld [vmem:[%s1562_s1 + $0x128] sm:$0xff]   ;;  %v1268_v5 = vld [vmem:[%s1562_s1 + $0x1a0] sm:$0xff]  }
  0x15   :  { %1094 = vmatpush3.bf16.msra.mxu1 %v1214_v19  ;;  %v39_v59 = vld [vmem:[%s1563_s0 + $0xa8] sm:$0xff]  ;;  %v1262_v62 = vld [vmem:[%s1562_s1 + $0x170] sm:$0xff]   ;;  %v1263_v63 = vld [vmem:[%s1562_s1 + $0x198] sm:$0xff]  }
  0x16   :  { %1095 = vmatprep.subr.bf16.mxu1 %v1217_v22  ;;  %v950_v60 = vcombine.high %v39_v59, %v39_v59  ;;  %v949_v61 = vcombine.low %v39_v59, %v39_v59  ;;  %v40_v0 = vld [vmem:[%s1563_s0 + $0xb0] sm:$0xff]  ;;  %v1267_v4 = vld [vmem:[%s1562_s1 + $0x178] sm:$0xff]   ;;  %v1273_v8 = vld [vmem:[%s1562_s1 + $0x1a8] sm:$0xff]  }
  0x17   :  { %1056 = vmatpush3.bf16.msra.mxu0 %v1216_v21  ;;  %v952_v1 = vcombine.high %v40_v0, %v40_v0  ;;  %v1265_v2 = vld [vmem:[%s1562_s1 + $0x130] sm:$0xff]   ;;  %v951_v3 = vcombine.low %v40_v0, %v40_v0  ;;  %v1269_v6 = vld [vmem:[%s1562_s1 + $0x138] sm:$0xff]   ;;  %v1276_v11 = vld [vmem:[%s1563_s0 + $0x4c] ss:$28 sps:$4 sm:$0xff]  }
  0x18   :  { %1057 = vmatprep.subr.bf16.mxu0 %v1219_v24  ;;  %v1272_v7 = vld [vmem:[%s1563_s0 + $0x14] ss:$28 sps:$4 sm:$0xff]   ;;  %v1282_v13 = vld [vmem:[%s1563_s0 + $0x88] ss:$28 sps:$4 sm:$0xff]   ;;  %v1283_v16 = vld [vmem:[%s1563_s0 + $0xc0] ss:$0 sps:$4 sm:$0xff]  }
  0x19   :  { %1096 = vmatpush3.bf16.msra.mxu1 %v1218_v23  ;;  %v1274_v9 = vld [vmem:[%s1563_s0 + $0x18] ss:$28 sps:$4 sm:$0xff]   ;;  %v1270_v10 = vld [vmem:[%s1563_s0 + $0x10] ss:$28 sps:$4 sm:$0xff]   ;;  %v1278_v14 = vld [vmem:[%s1563_s0 + $0x48] ss:$28 sps:$4 sm:$0xff]  }
  0x1a   :  { %1097 = vmatprep.subr.bf16.mxu1 %v1221_v26  ;;  %v1275_v12 = vld [vmem:[%s1563_s0 + $0x50] ss:$28 sps:$4 sm:$0xff]   ;;  %v1279_v15 = vld [vmem:[%s1563_s0 + $0x84] ss:$28 sps:$4 sm:$0xff]   ;;  %v41_v17 = vld [vmem:[%s1563_s0 + $0xb8] sm:$0xff] }
  0x1b   :  { %1058 = vmatpush3.bf16.msra.mxu0 %v1220_v25  ;;  %v1281_v18 = vld [vmem:[%s1563_s0 + $0x80] ss:$28 sps:$4 sm:$0xff]   ;;  %v954_v19 = vcombine.high %v41_v17, %v41_v17  ;;  %v953_v20 = vcombine.low %v41_v17, %v41_v17 }
  0x1c   :  { %1059 = vmatprep.subr.bf16.mxu0 %v1223_v28  ;;  %v927_v22 = vld [vmem:[%s1564_s2] ss:$0 sm:$0xff] }
  0x1d   :  { %1098 = vmatpush3.bf16.msra.mxu1 %v1222_v27 }
  0x1e   :  { %1099 = vmatprep.subr.bf16.mxu1 %v1225_v30 }
  0x1f   :  { %1060 = vmatpush3.bf16.msra.mxu0 %v1224_v29 }
  0x20   :  { %1125 = vmatprep.subr.bf16.mxu0 %v1230_v34 }
  0x21   :  { %1100 = vmatpush3.bf16.msra.mxu1 %v1229_v33 }
  0x22   :  { %657 = vmatmul.mubr.bf16.vlgmr.msra.gmra.mrb[0].mxu0 %v1226_v31  ;;  %1175 = vmatprep.subr.bf16.mxu1 %v1246_v47 }
  0x23   :  { %1126 = vmatpush3.bf16.msra.mxu0 %v1234_v37  ;;  %664 = vmatprep.mubr.bf16.mxu0 %v1237_v40 }
  0x24   :  { %721 = vmatmul.mubr.bf16.vlgmr.msra.gmra.mrb[0].mxu1 %v1231_v35  ;;  %1127 = vmatprep.subr.bf16.mxu0 %v1235_v38 }
  0x25   :  { %728 = vmatprep.mubr.bf16.mxu1 %v1241_v43  ;;  %1176 = vmatpush3.bf16.msra.mxu1 %v1246_v47 }
  0x26   :  { %1177 = vmatprep.subr.bf16.mxu1 %v1252_v52 }
  0x27   :  { %1128 = vmatpush3.bf16.msra.mxu0 %v1236_v39 }
  0x28   :  { %1129 = vmatprep.subr.bf16.mxu0 %v1240_v42 }
  0x29   :  { %1178 = vmatpush3.bf16.msra.mxu1 %v1252_v52 }
  0x2a   :  { %665 = vmatmul.mubr.bf16.gmra.mrb[4].mxu0 %v1239_v41  ;;  %1179 = vmatprep.subr.bf16.mxu1 %v1258_v57 }
  0x2b   :  { %1130 = vmatpush3.bf16.msra.mxu0 %v1243_v44  ;;  %672 = vmatprep.mubr.bf16.mxu0 %v1248_v49 }
  0x2c   :  { %729 = vmatmul.mubr.bf16.gmra.mrb[4].mxu1 %v1244_v45  ;;  %1131 = vmatprep.subr.bf16.mxu0 %v1245_v46 }
  0x2d   :  { %736 = vmatprep.mubr.bf16.mxu1 %v1253_v53  ;;  %1180 = vmatpush3.bf16.msra.mxu1 %v1258_v57 }
  0x2e   :  { %1181 = vmatprep.subr.bf16.mxu1 %v1263_v63 }
  0x2f   :  { %1132 = vmatpush3.bf16.msra.mxu0 %v1247_v48 }
  0x30   :  { %1133 = vmatprep.subr.bf16.mxu0 %v1251_v51 }
  0x31   :  { %1182 = vmatpush3.bf16.msra.mxu1 %v1263_v63 }
  0x32   :  { %673 = vmatmul.mubr.bf16.gmra.mrb[8].mxu0 %v1250_v50  ;;  %1183 = vmatprep.subr.bf16.mxu1 %v1268_v5 }
  0x33   :  { %1134 = vmatpush3.bf16.msra.mxu0 %v1255_v54  ;;  %680 = vmatprep.mubr.bf16.mxu0 %v950_v60 }
  0x34   :  { %737 = vmatmul.mubr.bf16.gmra.mrb[8].mxu1 %v1256_v55  ;;  %1135 = vmatprep.subr.bf16.mxu0 %v1257_v56 }
  0x35   :  { %744 = vmatprep.mubr.bf16.mxu1 %v952_v1  ;;  %1184 = vmatpush3.bf16.msra.mxu1 %v1268_v5 }
  0x36   :  { %1185 = vmatprep.subr.bf16.mxu1 %v1273_v8 }
  0x37   :  { %1136 = vmatpush3.bf16.msra.mxu0 %v1259_v58 }
  0x38   :  { %1137 = vmatprep.subr.bf16.mxu0 %v1262_v62 }
  0x39   :  { %1186 = vmatpush3.bf16.msra.mxu1 %v1273_v8 }
  0x3a   :  { %681 = vmatmul.mubr.bf16.gmra.mrb[12].mxu0 %v949_v61 }
  0x3b   :  { %1138 = vmatpush3.bf16.msra.mxu0 %v1265_v2  ;;  %784 = vmatprep.mubr.bf16.mxu0 %v1272_v7 }
  0x3c   :  { %745 = vmatmul.mubr.bf16.gmra.mrb[12].mxu1 %v951_v3  ;;  %1139 = vmatprep.subr.bf16.mxu0 %v1267_v4 }
  0x3d   :  { %1187 = vmatprep.mubr.msk.bf16.mxu1 %vm611_vm0, %v1274_v9 }
  0x3f   :  { %1140 = vmatpush3.bf16.msra.mxu0 %v1269_v6 }
  0x42   :  { %785 = vmatmul.mubr.bf16.vlgmr.msra.gmra.mrb[16].mxu0 %v1270_v10 }
  0x43   :  { %792 = vmatprep.mubr.bf16.mxu0 %v1276_v11 }
  0x44   :  { %1188 = vmatmul.mubr.msk.bf16.vlgmr.msra.gmra.mrb[16].mxu1 %vm611_vm0, %v1275_v12 }
  0x45   :  { %1191 = vmatprep.mubr.msk.bf16.mxu1 %vm611_vm0, %v1282_v13 }
  0x4a   :  { %793 = vmatmul.mubr.bf16.gmra.mrb[20].mxu0 %v1278_v14 }
  0x4b   :  { %800 = vmatprep.mubr.bf16.mxu0 %v1279_v15 }
  0x4c   :  { %1192 = vmatmul.mubr.msk.bf16.gmra.mrb[20].mxu1 %vm611_vm0, %v1283_v16 }
  0x52   :  { %801 = vmatmul.mubr.bf16.gmra.mrb[24].mxu0 %v1281_v18 }
  0x53   :  { %808 = vmatprep.mubr.bf16.mxu0 %v954_v19 }
  0x5a   :  { %809 = vmatmul.mubr.bf16.gmra.mrb[28].mxu0 %v953_v20 }
  0xf5   :  { %v1061_v21 = vpop.f32.mrb[0].mxu0 }
  0xf6   :  { %v1062_v23 = vpop.f32.mrb[1].mxu0 }
  0xf7   :  { %v1063_v24 = vadd.f32 %v1062_v23, %v1061_v21  ;;  %v1064_v25 = vpop.f32.mrb[2].mxu0  ;;  %v1101_v26 = vpop.f32.mrb[0].mxu1 }
  0xf8   :  { %v1065_v27 = vpop.f32.mrb[3].mxu0  ;;  %v1102_v30 = vpop.f32.mrb[1].mxu1 }
  0xf9   :  { %v659_v28 = vadd.f32 %v1063_v24, %v927_v22  ;;  %v1066_v29 = vadd.f32 %v1065_v27, %v1064_v25  ;;  %v1103_v31 = vadd.f32 %v1102_v30, %v1101_v26  ;;  %v1104_v32 = vpop.f32.mrb[2].mxu1 }
  0xfa   :  { %v1105_v34 = vpop.f32.mrb[3].mxu1 }
  0xfb   :  { %v662_v33 = vadd.f32 %v1066_v29, %v927_v22  ;;  %v723_v35 = vadd.f32 %v1103_v31, %v659_v28  ;;  %v1106_v36 = vadd.f32 %v1105_v34, %v1104_v32 }
  0xfd   :  { %v1067_v37 = vpop.f32.mrb[4].mxu0  ;;  %v726_v38 = vadd.f32 %v1106_v36, %v662_v33 }
  0xfe   :  { %v1068_v39 = vpop.f32.mrb[5].mxu0 }
  0xff   :  { %v1069_v40 = vadd.f32 %v1068_v39, %v1067_v37  ;;  %v1070_v41 = vpop.f32.mrb[6].mxu0  ;;  %v1107_v42 = vpop.f32.mrb[4].mxu1 }
 0x100   :  { %v1071_v43 = vpop.f32.mrb[7].mxu0  ;;  %v1108_v46 = vpop.f32.mrb[5].mxu1 }
 0x101   :  { %v667_v44 = vadd.f32 %v1069_v40, %v927_v22  ;;  %v1072_v45 = vadd.f32 %v1071_v43, %v1070_v41  ;;  %v1109_v47 = vadd.f32 %v1108_v46, %v1107_v42  ;;  %v1110_v48 = vpop.f32.mrb[6].mxu1 }
 0x102   :  { %v1111_v50 = vpop.f32.mrb[7].mxu1 }
 0x103   :  { %v670_v49 = vadd.f32 %v1072_v45, %v927_v22  ;;  %v731_v51 = vadd.f32 %v1109_v47, %v667_v44  ;;  %v1112_v52 = vadd.f32 %v1111_v50, %v1110_v48 }
 0x105   :  { %v1073_v53 = vpop.f32.mrb[8].mxu0  ;;  %v734_v54 = vadd.f32 %v1112_v52, %v670_v49 }
 0x106   :  { %v1074_v55 = vpop.f32.mrb[9].mxu0 }
 0x107   :  { %v1075_v56 = vadd.f32 %v1074_v55, %v1073_v53  ;;  %v1076_v57 = vpop.f32.mrb[10].mxu0  ;;  %v1113_v58 = vpop.f32.mrb[8].mxu1 }
 0x108   :  { %v1077_v59 = vpop.f32.mrb[11].mxu0  ;;  %v1114_v62 = vpop.f32.mrb[9].mxu1 }
 0x109   :  { %v675_v60 = vadd.f32 %v1075_v56, %v927_v22  ;;  %v1078_v61 = vadd.f32 %v1077_v59, %v1076_v57  ;;  %v1115_v63 = vadd.f32 %v1114_v62, %v1113_v58  ;;  %v1116_v0 = vpop.f32.mrb[10].mxu1 }
 0x10a   :  { %v1117_v2 = vpop.f32.mrb[11].mxu1 }
 0x10b   :  { %v678_v1 = vadd.f32 %v1078_v61, %v927_v22  ;;  %v739_v3 = vadd.f32 %v1115_v63, %v675_v60  ;;  %v1118_v4 = vadd.f32 %v1117_v2, %v1116_v0 }
 0x10d   :  { %v1079_v5 = vpop.f32.mrb[12].mxu0  ;;  %v742_v6 = vadd.f32 %v1118_v4, %v678_v1 }
 0x10e   :  { %v1080_v7 = vpop.f32.mrb[13].mxu0 }
 0x10f   :  { %v1081_v8 = vadd.f32 %v1080_v7, %v1079_v5  ;;  %v1082_v9 = vpop.f32.mrb[14].mxu0  ;;  %v1119_v10 = vpop.f32.mrb[12].mxu1 }
 0x110   :  { %v1083_v11 = vpop.f32.mrb[15].mxu0  ;;  %v1120_v13 = vpop.f32.mrb[13].mxu1 }
 0x111   :  { %v683_v12 = vadd.f32 %v1081_v8, %v927_v22  ;;  %v1121_v14 = vadd.f32 %v1120_v13, %v1119_v10  ;;  %v1122_v15 = vpop.f32.mrb[14].mxu1 }
 0x112   :  { %v1123_v16 = vpop.f32.mrb[15].mxu1 }
 0x113   :  { %v747_v17 = vadd.f32 %v1121_v14, %v683_v12 }
 0x115   :  { %v1141_v18 = vpop.f32.mrb[16].mxu0 }
 0x116   :  { %v1142_v19 = vpop.f32.mrb[17].mxu0 }
 0x117   :  { %v1143_v20 = vadd.f32 %v1142_v19, %v1141_v18  ;;  %v1144_v21 = vpop.f32.mrb[18].mxu0  ;;  %v1189_v24 = vpop.f32.mrb[16].mxu1 }
 0x118   :  { %v1145_v23 = vpop.f32.mrb[19].mxu0  ;;  %v850_v27 = vpop.f32.mrb[17].mxu1 }
 0x119   :  { %v1146_v25 = vadd.f32 %v1145_v23, %v1144_v21  ;;  %v787_v26 = vadd.f32 %v1143_v20, %v723_v35  ;;  %v1190_v28 = vpop.f32.mrb[18].mxu1 }
 0x11a   :  { %v853_v31 = vpop.f32.mrb[19].mxu1 }
 0x11b   :  { %v851_v29 = vadd.f32 %v850_v27, %v787_v26  ;;  %v790_v30 = vadd.f32 %v1146_v25, %v726_v38 }
 0x11d   :  { %v854_v32 = vadd.f32 %v853_v31, %v790_v30  ;;  %v1147_v22 = vpop.f32.mrb[20].mxu0  ;;  %v880_v34 = vmax.f32 %v851_v29, 0.0 }
 0x11e   :  { %v1148_v33 = vpop.f32.mrb[21].mxu0 }
 0x11f   :  { %v881_v36 = vmax.f32 %v854_v32, 0.0  ;;  %v1149_v37 = vadd.f32 %v1148_v33, %v1147_v22  ;;  %v1150_v39 = vpop.f32.mrb[22].mxu0  ;;  %v1193_v41 = vpop.f32.mrb[20].mxu1 }
 0x120   :  { %v1151_v40 = vpop.f32.mrb[23].mxu0  ;;  %v866_v45 = vpop.f32.mrb[21].mxu1 }
 0x121   :  { %v1031_v42 = vpack.c.bf16 %v881_v36, %v880_v34  ;;  %v795_v43 = vadd.f32 %v1149_v37, %v731_v51  ;;  %v1152_v44 = vadd.f32 %v1151_v40, %v1150_v39  ;;  %v1194_v46 = vpop.f32.mrb[22].mxu1 }
 0x122   :  { %v869_v47 = vpop.f32.mrb[23].mxu1 }
 0x123   :  { %1032 = vst [vmem:[%s1565_s3] sm:$0xff] %v1031_v42   ;;  %v859_v35 = vadd.f32 %v1189_v24, %v795_v43  ;;  %v798_v38 = vadd.f32 %v1152_v44, %v734_v54 }
 0x125   :  { %v862_v48 = vadd.f32 %v1190_v28, %v798_v38  ;;  %v1153_v49 = vpop.f32.mrb[24].mxu0  ;;  %v882_v52 = vmax.f32 %v859_v35, 0.0 }
 0x126   :  { %v1154_v50 = vpop.f32.mrb[25].mxu0 }
 0x127   :  { %v883_v53 = vmax.f32 %v862_v48, 0.0  ;;  %v1155_v55 = vadd.f32 %v1154_v50, %v1153_v49  ;;  %v1156_v56 = vpop.f32.mrb[26].mxu0 }
 0x128   :  { %v1157_v57 = vpop.f32.mrb[27].mxu0 }
 0x129   :  { %v1036_v58 = vpack.c.bf16 %v883_v53, %v882_v52  ;;  %v1158_v51 = vadd.f32 %v1157_v57, %v1156_v56  ;;  %v803_v59 = vadd.f32 %v1155_v55, %v739_v3 }
 0x12b   :  { %1043 = vst [vmem:[%s1565_s3 + $0x8] sm:$0xff] %v1036_v58   ;;  %v867_v60 = vadd.f32 %v866_v45, %v803_v59  ;;  %v806_v61 = vadd.f32 %v1158_v51, %v742_v6 }
 0x12d   :  { %v870_v62 = vadd.f32 %v869_v47, %v806_v61  ;;  %v1159_v54 = vpop.f32.mrb[28].mxu0  ;;  %v884_v0 = vmax.f32 %v867_v60, 0.0 }
 0x12e   :  { %v1160_v63 = vpop.f32.mrb[29].mxu0 }
 0x12f   :  { %v885_v1 = vmax.f32 %v870_v62, 0.0  ;;  %v1161_v2 = vadd.f32 %v1160_v63, %v1159_v54  ;;  %v1162_v4 = vpop.f32.mrb[30].mxu0 }
 0x130   :  { %v1163_v5 = vpop.f32.mrb[31].mxu0 }
 0x131   :  { %v1041_v7 = vpack.c.bf16 %v885_v1, %v884_v0  ;;  %v811_v8 = vadd.f32 %v1161_v2, %v747_v17 }
 0x133   :  { %1044 = vst [vmem:[%s1565_s3 + $0x10] sm:$0xff] %v1041_v7   ;;  %v875_v3 = vadd.f32 %v1193_v41, %v811_v8 }
 0x135   :  { %v886_v9 = vmax.f32 %v875_v3, 0.0 }
 0x137   :  { %v1027_v10 = vpack.c.bf16 %v886_v9, %v886_v9 }
 0x139   :  { %922 = vst [vmem:[%s1565_s3 + $0x18] sm:$0xf] %v1027_v10 }

// kernel: hybridsn_forward.8
= control target key start
LH: loop header
LB: loop body
LE: loop exit
PB: predicated region body
PF: predicated region fallthrough
CT: control target
= control target key end

     0   :  { %vm947_vm0 = vcmask 519168   ;;  %s1578_s1 = inlined_call_operand.vmem [shape: bf16[1152,64], index: 1, kind: input, shape index: {}]   ;;  %s1579_s0 = inlined_call_operand.vmem [shape: bf16[24,1152], index: 0, kind: input, shape index: {}]   ;;  %s1580_s2 = inlined_call_operand.vmem [shape: f32[1,64], index: 2, kind: input, shape index: {}]   ;;  %s1581_s3 = inlined_call_operand.vmem [shape: bf16[24,64], index: 3, kind: output, shape index: {}]  }
   0x1   :  { %v1194_v0 = vld [vmem:[%s1578_s1 + $0x40] sm:$0xff]   ;;  %v1198_v4 = vld [vmem:[%s1578_s1 + $0x48] sm:$0xff]   ;;  %v1202_v8 = vld [vmem:[%s1578_s1 + $0x50] sm:$0xff]  }
   0x2   :  { %v1195_v1 = vld [vmem:[%s1578_s1] sm:$0xff]   ;;  %1052 = vmatprep.subr.bf16.mxu0 %v1194_v0  ;;  %v1199_v5 = vld [vmem:[%s1578_s1 + $0x8] sm:$0xff]   ;;  %v1203_v9 = vld [vmem:[%s1578_s1 + $0x10] sm:$0xff]  }
   0x3   :  { %v1196_v2 = vld [vmem:[%s1578_s1 + $0xc0] sm:$0xff]   ;;  %1053 = vmatpush3.bf16.msra.mxu0 %v1195_v1  ;;  %v1200_v6 = vld [vmem:[%s1578_s1 + $0xc8] sm:$0xff]   ;;  %v1204_v10 = vld [vmem:[%s1578_s1 + $0xd0] sm:$0xff]  }
   0x4   :  { %v1197_v3 = vld [vmem:[%s1578_s1 + $0x80] sm:$0xff]   ;;  %1080 = vmatprep.subr.bf16.mxu1 %v1196_v2  ;;  %1054 = vmatprep.subr.bf16.mxu0 %v1198_v4  ;;  %v1201_v7 = vld [vmem:[%s1578_s1 + $0x88] sm:$0xff]   ;;  %v1205_v11 = vld [vmem:[%s1578_s1 + $0x90] sm:$0xff]  }
   0x5   :  { %1081 = vmatpush3.bf16.msra.mxu1 %v1197_v3  ;;  %v1206_v12 = vld [vmem:[%s1578_s1 + $0x58] sm:$0xff]   ;;  %v1210_v16 = vld [vmem:[%s1578_s1 + $0x60] sm:$0xff]   ;;  %v1214_v20 = vld [vmem:[%s1578_s1 + $0x68] sm:$0xff]  }
   0x6   :  { %1082 = vmatprep.subr.bf16.mxu1 %v1200_v6  ;;  %v1207_v13 = vld [vmem:[%s1578_s1 + $0x18] sm:$0xff]   ;;  %v1211_v17 = vld [vmem:[%s1578_s1 + $0x20] sm:$0xff]   ;;  %v1215_v21 = vld [vmem:[%s1578_s1 + $0x28] sm:$0xff]  }
   0x7   :  { %1055 = vmatpush3.bf16.msra.mxu0 %v1199_v5  ;;  %v1208_v14 = vld [vmem:[%s1578_s1 + $0xd8] sm:$0xff]   ;;  %v1212_v18 = vld [vmem:[%s1578_s1 + $0xe0] sm:$0xff]   ;;  %v1216_v22 = vld [vmem:[%s1578_s1 + $0xe8] sm:$0xff]  }
   0x8   :  { %1056 = vmatprep.subr.bf16.mxu0 %v1202_v8  ;;  %v1209_v15 = vld [vmem:[%s1578_s1 + $0x98] sm:$0xff]   ;;  %v1213_v19 = vld [vmem:[%s1578_s1 + $0xa0] sm:$0xff]   ;;  %v1217_v23 = vld [vmem:[%s1578_s1 + $0xa8] sm:$0xff]  }
   0x9   :  { %1083 = vmatpush3.bf16.msra.mxu1 %v1201_v7  ;;  %v1218_v24 = vld [vmem:[%s1578_s1 + $0x70] sm:$0xff]   ;;  %v1222_v28 = vld [vmem:[%s1578_s1 + $0x78] sm:$0xff]   ;;  %v1225_v31 = vld [vmem:[%s1579_s0] ss:$36 sps:$4 sm:$0xff]  }
   0xa   :  { %1084 = vmatprep.subr.bf16.mxu1 %v1204_v10  ;;  %v1219_v25 = vld [vmem:[%s1578_s1 + $0x30] sm:$0xff]   ;;  %v1223_v29 = vld [vmem:[%s1578_s1 + $0x38] sm:$0xff]   ;;  %v1227_v32 = vld [vmem:[%s1579_s0 + $0x4] ss:$36 sps:$4 sm:$0xff]  }
   0xb   :  { %1057 = vmatpush3.bf16.msra.mxu0 %v1203_v9  ;;  %v1220_v26 = vld [vmem:[%s1578_s1 + $0xf0] sm:$0xff]   ;;  %v1224_v30 = vld [vmem:[%s1578_s1 + $0xf8] sm:$0xff]   ;;  %723 = vmatprep.mubr.bf16.mxu0 %v1227_v32  ;;  %v1229_v34 = vld [vmem:[%s1578_s1 + $0x140] sm:$0xff]  }
   0xc   :  { %1058 = vmatprep.subr.bf16.mxu0 %v1206_v12  ;;  %v1221_v27 = vld [vmem:[%s1578_s1 + $0xb0] sm:$0xff]   ;;  %v1228_v33 = vld [vmem:[%s1578_s1 + $0xb8] sm:$0xff]   ;;  %v1230_v35 = vld [vmem:[%s1579_s0 + $0x8] ss:$36 sps:$4 sm:$0xff]  }
   0xd   :  { %1085 = vmatpush3.bf16.msra.mxu1 %v1205_v11  ;;  %v1232_v36 = vld [vmem:[%s1579_s0 + $0xc] ss:$36 sps:$4 sm:$0xff]   ;;  %v1233_v37 = vld [vmem:[%s1578_s1 + $0x100] sm:$0xff]   ;;  %v1244_v48 = vld [vmem:[%s1578_s1 + $0x158] sm:$0xff]  }
   0xe   :  { %1086 = vmatprep.subr.bf16.mxu1 %v1208_v14  ;;  %771 = vmatprep.mubr.bf16.mxu1 %v1232_v36  ;;  %v1234_v38 = vld [vmem:[%s1578_s1 + $0x1c0] sm:$0xff]   ;;  %v1236_v40 = vld [vmem:[%s1578_s1 + $0x148] sm:$0xff]   ;;  %v1240_v44 = vld [vmem:[%s1578_s1 + $0x150] sm:$0xff]  }
   0xf   :  { %1059 = vmatpush3.bf16.msra.mxu0 %v1207_v13  ;;  %v1235_v39 = vld [vmem:[%s1578_s1 + $0x180] sm:$0xff]   ;;  %v1237_v41 = vld [vmem:[%s1578_s1 + $0x108] sm:$0xff]   ;;  %v1241_v45 = vld [vmem:[%s1578_s1 + $0x110] sm:$0xff]  }
  0x10   :  { %1060 = vmatprep.subr.bf16.mxu0 %v1210_v16  ;;  %v1238_v42 = vld [vmem:[%s1578_s1 + $0x1c8] sm:$0xff]   ;;  %v1242_v46 = vld [vmem:[%s1578_s1 + $0x1d0] sm:$0xff]   ;;  %v1245_v49 = vld [vmem:[%s1578_s1 + $0x118] sm:$0xff]  }
  0x11   :  { %1087 = vmatpush3.bf16.msra.mxu1 %v1209_v15  ;;  %v1239_v43 = vld [vmem:[%s1578_s1 + $0x188] sm:$0xff]   ;;  %v1243_v47 = vld [vmem:[%s1578_s1 + $0x190] sm:$0xff]   ;;  %v1246_v50 = vld [vmem:[%s1578_s1 + $0x1d8] sm:$0xff]  }
  0x12   :  { %1088 = vmatprep.subr.bf16.mxu1 %v1212_v18  ;;  %v1247_v51 = vld [vmem:[%s1578_s1 + $0x198] sm:$0xff]   ;;  %v1248_v52 = vld [vmem:[%s1578_s1 + $0x160] sm:$0xff]   ;;  %v1252_v56 = vld [vmem:[%s1578_s1 + $0x168] sm:$0xff]  }
  0x13   :  { %1061 = vmatpush3.bf16.msra.mxu0 %v1211_v17  ;;  %v1249_v53 = vld [vmem:[%s1578_s1 + $0x120] sm:$0xff]   ;;  %v25_v57 = vld [vmem:[%s1579_s0 + $0x48] sm:$0xff]  ;;  %v1258_v63 = vld [vmem:[%s1578_s1 + $0x170] sm:$0xff]  }
  0x14   :  { %1062 = vmatprep.subr.bf16.mxu0 %v1214_v20  ;;  %v1250_v54 = vld [vmem:[%s1578_s1 + $0x1e0] sm:$0xff]   ;;  %v966_v58 = vcombine.high %v25_v57, %v25_v57  ;;  %v1254_v59 = vld [vmem:[%s1578_s1 + $0x128] sm:$0xff]   ;;  %v965_v60 = vcombine.low %v25_v57, %v25_v57  ;;  %v26_v0 = vld [vmem:[%s1579_s0 + $0x50] sm:$0xff] }
  0x15   :  { %1089 = vmatpush3.bf16.msra.mxu1 %v1213_v19  ;;  %v1251_v55 = vld [vmem:[%s1578_s1 + $0x1a0] sm:$0xff]   ;;  %v1256_v61 = vld [vmem:[%s1578_s1 + $0x1e8] sm:$0xff]   ;;  %v968_v1 = vcombine.high %v26_v0, %v26_v0  ;;  %v1260_v2 = vld [vmem:[%s1578_s1 + $0x130] sm:$0xff]   ;;  %v967_v3 = vcombine.low %v26_v0, %v26_v0 }
  0x16   :  { %1090 = vmatprep.subr.bf16.mxu1 %v1216_v22  ;;  %v1257_v62 = vld [vmem:[%s1578_s1 + $0x1a8] sm:$0xff]   ;;  %v1262_v4 = vld [vmem:[%s1578_s1 + $0x1f0] sm:$0xff]   ;;  %v1264_v6 = vld [vmem:[%s1578_s1 + $0x178] sm:$0xff]  }
  0x17   :  { %1063 = vmatpush3.bf16.msra.mxu0 %v1215_v21  ;;  %v1263_v5 = vld [vmem:[%s1578_s1 + $0x1b0] sm:$0xff]   ;;  %v1265_v7 = vld [vmem:[%s1578_s1 + $0x138] sm:$0xff]   ;;  %v1271_v12 = vld [vmem:[%s1578_s1 + $0x200] sm:$0xff]  }
  0x18   :  { %1064 = vmatprep.subr.bf16.mxu0 %v1218_v24  ;;  %v1266_v8 = vld [vmem:[%s1578_s1 + $0x1f8] sm:$0xff]   ;;  %v1267_v9 = vld [vmem:[%s1579_s0 + $0x10] ss:$36 sps:$4 sm:$0xff]   ;;  %v1275_v15 = vld [vmem:[%s1578_s1 + $0x208] sm:$0xff]  }
  0x19   :  { %1091 = vmatpush3.bf16.msra.mxu1 %v1217_v23  ;;  %v1269_v10 = vld [vmem:[%s1579_s0 + $0x14] ss:$36 sps:$4 sm:$0xff]   ;;  %v1274_v14 = vld [vmem:[%s1579_s0 + $0x1c] ss:$36 sps:$4 sm:$0xff]  }
  0x1a   :  { %1092 = vmatprep.subr.bf16.mxu1 %v1220_v26  ;;  %v1270_v11 = vld [vmem:[%s1578_s1 + $0x1b8] sm:$0xff]   ;;  %v1278_v18 = vld [vmem:[%s1578_s1 + $0x210] sm:$0xff]   ;;  %v28_v19 = vld [vmem:[%s1579_s0 + $0x60] sm:$0xff] }
  0x1b   :  { %1065 = vmatpush3.bf16.msra.mxu0 %v1219_v25  ;;  %v1272_v13 = vld [vmem:[%s1579_s0 + $0x18] ss:$36 sps:$4 sm:$0xff]   ;;  %v972_v21 = vcombine.high %v28_v19, %v28_v19  ;;  %v971_v22 = vcombine.low %v28_v19, %v28_v19  ;;  %v1286_v24 = vld [vmem:[%s1579_s0 + $0x20] ss:$36 sps:$4 sm:$0xff]   ;;  %v1283_v26 = vld [vmem:[%s1578_s1 + $0x228] sm:$0xff]  }
  0x1c   :  { %1066 = vmatprep.subr.bf16.mxu0 %v1222_v28  ;;  %v27_v16 = vld [vmem:[%s1579_s0 + $0x58] sm:$0xff]  ;;  %v1282_v25 = vld [vmem:[%s1578_s1 + $0x220] sm:$0xff]  }
  0x1d   :  { %1093 = vmatpush3.bf16.msra.mxu1 %v1221_v27  ;;  %v970_v17 = vcombine.high %v27_v16, %v27_v16  ;;  %v969_v20 = vcombine.low %v27_v16, %v27_v16  ;;  %v1281_v23 = vld [vmem:[%s1578_s1 + $0x218] sm:$0xff]   ;;  %v1284_v27 = vld [vmem:[%s1578_s1 + $0x230] sm:$0xff]  }
  0x1e   :  { %1094 = vmatprep.subr.bf16.mxu1 %v1224_v30  ;;  %v1285_v28 = vld [vmem:[%s1578_s1 + $0x238] sm:$0xff]  }
  0x1f   :  { %1067 = vmatpush3.bf16.msra.mxu0 %v1223_v29  ;;  %v1287_v29 = vld [vmem:[%s1579_s0 + $0x68] ss:$0 sps:$4 sm:$0xff]  }
  0x20   :  { %1108 = vmatprep.subr.bf16.mxu0 %v1229_v34 }
  0x21   :  { %1095 = vmatpush3.bf16.msra.mxu1 %v1228_v33 }
  0x22   :  { %724 = vmatmul.mubr.bf16.vlgmr.msra.gmra.mrb[0].mxu0 %v1225_v31  ;;  %1136 = vmatprep.subr.bf16.mxu1 %v1234_v38  ;;  %v955_v31 = vld [vmem:[%s1580_s2] ss:$0 sm:$0xff] }
  0x23   :  { %1109 = vmatpush3.bf16.msra.mxu0 %v1233_v37  ;;  %731 = vmatprep.mubr.bf16.mxu0 %v966_v58 }
  0x24   :  { %772 = vmatmul.mubr.bf16.vlgmr.msra.gmra.mrb[0].mxu1 %v1230_v35  ;;  %1110 = vmatprep.subr.bf16.mxu0 %v1236_v40 }
  0x25   :  { %1137 = vmatpush3.bf16.msra.mxu1 %v1235_v39  ;;  %779 = vmatprep.mubr.bf16.mxu1 %v968_v1 }
  0x26   :  { %1138 = vmatprep.subr.bf16.mxu1 %v1238_v42 }
  0x27   :  { %1111 = vmatpush3.bf16.msra.mxu0 %v1237_v41 }
  0x28   :  { %1112 = vmatprep.subr.bf16.mxu0 %v1240_v44 }
  0x29   :  { %1139 = vmatpush3.bf16.msra.mxu1 %v1239_v43 }
  0x2a   :  { %1140 = vmatprep.subr.bf16.mxu1 %v1242_v46  ;;  %732 = vmatmul.mubr.bf16.gmra.mrb[4].mxu0 %v965_v60 }
  0x2b   :  { %1113 = vmatpush3.bf16.msra.mxu0 %v1241_v45  ;;  %819 = vmatprep.mubr.bf16.mxu0 %v1269_v10 }
  0x2c   :  { %1114 = vmatprep.subr.bf16.mxu0 %v1244_v48  ;;  %780 = vmatmul.mubr.bf16.gmra.mrb[4].mxu1 %v967_v3 }
  0x2d   :  { %1141 = vmatpush3.bf16.msra.mxu1 %v1243_v47  ;;  %867 = vmatprep.mubr.bf16.mxu1 %v1274_v14 }
  0x2e   :  { %1142 = vmatprep.subr.bf16.mxu1 %v1246_v50 }
  0x2f   :  { %1115 = vmatpush3.bf16.msra.mxu0 %v1245_v49 }
  0x30   :  { %1116 = vmatprep.subr.bf16.mxu0 %v1248_v52 }
  0x31   :  { %1143 = vmatpush3.bf16.msra.mxu1 %v1247_v51 }
  0x32   :  { %1144 = vmatprep.subr.bf16.mxu1 %v1250_v54 }
  0x33   :  { %1117 = vmatpush3.bf16.msra.mxu0 %v1249_v53 }
  0x34   :  { %1118 = vmatprep.subr.bf16.mxu0 %v1252_v56 }
  0x35   :  { %1145 = vmatpush3.bf16.msra.mxu1 %v1251_v55 }
  0x36   :  { %1146 = vmatprep.subr.bf16.mxu1 %v1256_v61 }
  0x37   :  { %1119 = vmatpush3.bf16.msra.mxu0 %v1254_v59 }
  0x38   :  { %1120 = vmatprep.subr.bf16.mxu0 %v1258_v63 }
  0x39   :  { %1147 = vmatpush3.bf16.msra.mxu1 %v1257_v62 }
  0x3a   :  { %1148 = vmatprep.subr.bf16.mxu1 %v1262_v4 }
  0x3b   :  { %1121 = vmatpush3.bf16.msra.mxu0 %v1260_v2 }
  0x3c   :  { %1122 = vmatprep.subr.bf16.mxu0 %v1264_v6 }
  0x3d   :  { %1149 = vmatpush3.bf16.msra.mxu1 %v1263_v5 }
  0x3e   :  { %1150 = vmatprep.subr.bf16.mxu1 %v1266_v8 }
  0x3f   :  { %1123 = vmatpush3.bf16.msra.mxu0 %v1265_v7 }
  0x40   :  { %1174 = vmatprep.subr.bf16.mxu0 %v1271_v12 }
  0x41   :  { %1151 = vmatpush3.bf16.msra.mxu1 %v1270_v11 }
  0x42   :  { %820 = vmatmul.mubr.bf16.vlgmr.msra.gmra.mrb[8].mxu0 %v1267_v9 }
  0x43   :  { %1175 = vmatpush3.bf16.msra.mxu0 %v1271_v12  ;;  %827 = vmatprep.mubr.bf16.mxu0 %v970_v17 }
  0x44   :  { %868 = vmatmul.mubr.bf16.vlgmr.msra.gmra.mrb[8].mxu1 %v1272_v13  ;;  %1176 = vmatprep.subr.bf16.mxu0 %v1275_v15 }
  0x45   :  { %875 = vmatprep.mubr.bf16.mxu1 %v972_v21 }
  0x47   :  { %1177 = vmatpush3.bf16.msra.mxu0 %v1275_v15 }
  0x48   :  { %1178 = vmatprep.subr.bf16.mxu0 %v1278_v18 }
  0x4a   :  { %828 = vmatmul.mubr.bf16.gmra.mrb[12].mxu0 %v969_v20 }
  0x4b   :  { %1179 = vmatpush3.bf16.msra.mxu0 %v1278_v18  ;;  %1190 = vmatprep.mubr.bf16.mxu0 %v1286_v24 }
  0x4c   :  { %876 = vmatmul.mubr.bf16.gmra.mrb[12].mxu1 %v971_v22  ;;  %1180 = vmatprep.subr.bf16.mxu0 %v1281_v23 }
  0x4f   :  { %1181 = vmatpush3.bf16.msra.mxu0 %v1281_v23 }
  0x50   :  { %1182 = vmatprep.subr.bf16.mxu0 %v1282_v25 }
  0x53   :  { %1183 = vmatpush3.bf16.msra.mxu0 %v1282_v25 }
  0x54   :  { %1184 = vmatprep.subr.bf16.mxu0 %v1283_v26 }
  0x57   :  { %1185 = vmatpush3.bf16.msra.mxu0 %v1283_v26 }
  0x58   :  { %1186 = vmatprep.subr.bf16.mxu0 %v1284_v27 }
  0x5b   :  { %1187 = vmatpush3.bf16.msra.mxu0 %v1284_v27 }
  0x5c   :  { %1188 = vmatprep.subr.bf16.mxu0 %v1285_v28 }
  0x5f   :  { %1189 = vmatpush3.bf16.msra.mxu0 %v1285_v28 }
  0x62   :  { %1191 = vmatmul.mubr.bf16.vlgmr.msra.gmra.mrb[16].mxu0 %v1287_v29 }
  0xf5   :  { %v1068_v30 = vpop.f32.mrb[0].mxu0 }
  0xf6   :  { %v1069_v32 = vpop.f32.mrb[1].mxu0 }
  0xf7   :  { %v1070_v33 = vadd.f32 %v1069_v32, %v1068_v30  ;;  %v1071_v34 = vpop.f32.mrb[2].mxu0  ;;  %v1096_v35 = vpop.f32.mrb[0].mxu1 }
  0xf8   :  { %v1072_v36 = vpop.f32.mrb[3].mxu0  ;;  %v1097_v39 = vpop.f32.mrb[1].mxu1 }
  0xf9   :  { %v726_v37 = vadd.f32 %v1070_v33, %v955_v31  ;;  %v1073_v38 = vadd.f32 %v1072_v36, %v1071_v34  ;;  %v1098_v40 = vadd.f32 %v1097_v39, %v1096_v35  ;;  %v1099_v41 = vpop.f32.mrb[2].mxu1 }
  0xfa   :  { %v1100_v43 = vpop.f32.mrb[3].mxu1 }
  0xfb   :  { %v729_v42 = vadd.f32 %v1073_v38, %v955_v31  ;;  %v774_v44 = vadd.f32 %v1098_v40, %v726_v37  ;;  %v1101_v45 = vadd.f32 %v1100_v43, %v1099_v41 }
  0xfd   :  { %v777_v46 = vadd.f32 %v1101_v45, %v729_v42  ;;  %v1074_v47 = vpop.f32.mrb[4].mxu0 }
  0xfe   :  { %v1075_v48 = vpop.f32.mrb[5].mxu0 }
  0xff   :  { %v1076_v49 = vadd.f32 %v1075_v48, %v1074_v47  ;;  %v1077_v50 = vpop.f32.mrb[6].mxu0  ;;  %v1102_v53 = vpop.f32.mrb[4].mxu1 }
 0x100   :  { %v1078_v51 = vpop.f32.mrb[7].mxu0  ;;  %v1103_v54 = vpop.f32.mrb[5].mxu1 }
 0x101   :  { %v734_v52 = vadd.f32 %v1076_v49, %v955_v31  ;;  %v1104_v55 = vadd.f32 %v1103_v54, %v1102_v53  ;;  %v1105_v56 = vpop.f32.mrb[6].mxu1 }
 0x102   :  { %v1106_v57 = vpop.f32.mrb[7].mxu1 }
 0x103   :  { %v782_v58 = vadd.f32 %v1104_v55, %v734_v52 }
 0x115   :  { %v1124_v59 = vpop.f32.mrb[8].mxu0 }
 0x116   :  { %v1125_v60 = vpop.f32.mrb[9].mxu0 }
 0x117   :  { %v1126_v61 = vadd.f32 %v1125_v60, %v1124_v59  ;;  %v1127_v62 = vpop.f32.mrb[10].mxu0  ;;  %v1152_v63 = vpop.f32.mrb[8].mxu1 }
 0x118   :  { %v1128_v0 = vpop.f32.mrb[11].mxu0  ;;  %v1153_v3 = vpop.f32.mrb[9].mxu1 }
 0x119   :  { %v822_v1 = vadd.f32 %v1126_v61, %v774_v44  ;;  %v1129_v2 = vadd.f32 %v1128_v0, %v1127_v62  ;;  %v1154_v4 = vadd.f32 %v1153_v3, %v1152_v63  ;;  %v1155_v5 = vpop.f32.mrb[10].mxu1 }
 0x11a   :  { %v1156_v7 = vpop.f32.mrb[11].mxu1 }
 0x11b   :  { %v825_v6 = vadd.f32 %v1129_v2, %v777_v46  ;;  %v1157_v8 = vadd.f32 %v1156_v7, %v1155_v5  ;;  %v870_v9 = vadd.f32 %v1154_v4, %v822_v1 }
 0x11d   :  { %v1130_v10 = vpop.f32.mrb[12].mxu0  ;;  %v873_v12 = vadd.f32 %v1157_v8, %v825_v6 }
 0x11e   :  { %v1131_v11 = vpop.f32.mrb[13].mxu0 }
 0x11f   :  { %v1132_v13 = vadd.f32 %v1131_v11, %v1130_v10  ;;  %v1133_v14 = vpop.f32.mrb[14].mxu0  ;;  %v1158_v15 = vpop.f32.mrb[12].mxu1 }
 0x120   :  { %v1134_v16 = vpop.f32.mrb[15].mxu0  ;;  %v1159_v18 = vpop.f32.mrb[13].mxu1 }
 0x121   :  { %v830_v17 = vadd.f32 %v1132_v13, %v782_v58  ;;  %v1160_v19 = vadd.f32 %v1159_v18, %v1158_v15  ;;  %v1161_v20 = vpop.f32.mrb[14].mxu1 }
 0x122   :  { %v1162_v21 = vpop.f32.mrb[15].mxu1 }
 0x123   :  { %v878_v22 = vadd.f32 %v1160_v19, %v830_v17 }
 0x135   :  { %v1192_v23 = vpop.f32.mrb[16].mxu0 }
 0x136   :  { %v926_v24 = vadd.f32 %v1192_v23, %v878_v22  ;;  %v917_v25 = vpop.f32.mrb[17].mxu0 }
 0x137   :  { %v918_v26 = vadd.f32 %v917_v25, %v870_v9  ;;  %v1193_v27 = vpop.f32.mrb[18].mxu0 }
 0x138   :  { %v933_v28 = vmax.f32 %v926_v24, 0.0  ;;  %v920_v29 = vpop.f32.mrb[19].mxu0 }
 0x139   :  { %v931_v30 = vmax.f32 %v918_v26, 0.0  ;;  %v921_v31 = vadd.f32 %v920_v29, %v873_v12 }
 0x13a   :  { %v1051_v32 = vpack.c.bf16 %v933_v28, %v933_v28 }
 0x13b   :  { %v1049_v33 = vpack.c.bf16 %v931_v30, %v931_v30  ;;  %v932_v34 = vmax.f32 %v921_v31, 0.0 }
 0x13c   :  { %950 = vst.msk [vmem:[%s1581_s3 + $0x8] sm:$0xf] %vm947_vm0, %v1051_v32 }
 0x13d   :  { %948 = vst.msk [vmem:[%s1581_s3] sm:$0xf] %vm947_vm0, %v1049_v33  ;;  %v1050_v35 = vpack.c.bf16 %v932_v34, %v932_v34 }
 0x13f   :  { %949 = vst.msk [vmem:[%s1581_s3 + $0x4] sm:$0xf] %vm947_vm0, %v1050_v35 }

// kernel: hybridsn_forward.9
= control target key start
LH: loop header
LB: loop body
LE: loop exit
PB: predicated region body
PF: predicated region fallthrough
CT: control target
= control target key end

     0   :  { %vm502_vm0 = vcmask 523264   ;;  %vm1250_vm1 = vmmov 0   ;;  %vm932_vm2 = vcmask 80896   ;;  %s1609_s1 = inlined_call_operand.vmem [shape: bf16[576,256], index: 1, kind: input, shape index: {}]   ;;  %s1610_s0 = inlined_call_operand.vmem [shape: bf16[16,576], index: 0, kind: input, shape index: {}]   ;;  %s1611_s3 = inlined_call_operand.vmem [shape: bf16[256,128], index: 3, kind: input, shape index: {}]   ;;  %s1612_s5 = inlined_call_operand.vmem [shape: bf16[128,10], index: 5, kind: input, shape index: {}]   ;;  %s1613_s2 = inlined_call_operand.vmem [shape: f32[1,256], index: 2, kind: input, shape index: {}]   ;;  %s1614_s4 = inlined_call_operand.vmem [shape: f32[1,128], index: 4, kind: input, shape index: {}]   ;;  %s1615_s6 = inlined_call_operand.vmem [shape: f32[1,10], index: 6, kind: input, shape index: {}]   ;;  %s1616_s7 = inlined_call_operand.vmem [shape: f32[16,10], index: 7, kind: output, shape index: {}]  }
   0x1   :  { %v1109_v0 = vld [vmem:[%s1609_s1 + $0x104] ss:$8 sps:$4 sm:$0xff]   ;;  %v1111_v1 = vld [vmem:[%s1609_s1 + $0x100] ss:$8 sps:$4 sm:$0xff]   ;;  %v1112_v2 = vld [vmem:[%s1609_s1 + $0x114] ss:$8 sps:$4 sm:$0xff]  }
   0x2   :  { %549 = vmatprep.subr.bf16.mxu0 %v1109_v0  ;;  %v1114_v3 = vld [vmem:[%s1609_s1 + $0x110] ss:$8 sps:$4 sm:$0xff]   ;;  %v1115_v4 = vld [vmem:[%s1609_s1 + $0x124] ss:$8 sps:$4 sm:$0xff]   ;;  %v1120_v6 = vld [vmem:[%s1609_s1] ss:$8 sps:$4 sm:$0xff]  }
   0x3   :  { %550 = vmatpush1.bf16.msra.mxu0 %v1111_v1  ;;  %v1118_v5 = vld [vmem:[%s1609_s1 + $0x4] ss:$8 sps:$4 sm:$0xff]   ;;  %v1117_v7 = vld [vmem:[%s1609_s1 + $0x120] ss:$8 sps:$4 sm:$0xff]   ;;  %v1124_v8 = vld [vmem:[%s1609_s1 + $0x14] ss:$8 sps:$4 sm:$0xff]  }
   0x4   :  { %551 = vmatprep.subr.bf16.mxu0 %v1112_v2  ;;  %506 = vmatprep.subr.bf16.mxu1 %v1118_v5  ;;  %v1126_v9 = vld [vmem:[%s1609_s1 + $0x10] ss:$8 sps:$4 sm:$0xff]   ;;  %v1121_v10 = vld [vmem:[%s1609_s1 + $0x134] ss:$8 sps:$4 sm:$0xff]   ;;  %v1130_v12 = vld [vmem:[%s1609_s1 + $0x24] ss:$8 sps:$4 sm:$0xff]  }
   0x5   :  { %507 = vmatpush1.bf16.msra.mxu1 %v1120_v6  ;;  %v1123_v11 = vld [vmem:[%s1609_s1 + $0x130] ss:$8 sps:$4 sm:$0xff]   ;;  %v1127_v13 = vld [vmem:[%s1609_s1 + $0x144] ss:$8 sps:$4 sm:$0xff]   ;;  %v1132_v14 = vld [vmem:[%s1609_s1 + $0x20] ss:$8 sps:$4 sm:$0xff]  }
   0x6   :  { %508 = vmatprep.subr.bf16.mxu1 %v1124_v8  ;;  %v1136_v15 = vld [vmem:[%s1609_s1 + $0x34] ss:$8 sps:$4 sm:$0xff]   ;;  %v1129_v16 = vld [vmem:[%s1609_s1 + $0x140] ss:$8 sps:$4 sm:$0xff]   ;;  %v1138_v18 = vld [vmem:[%s1609_s1 + $0x30] ss:$8 sps:$4 sm:$0xff]  }
   0x7   :  { %552 = vmatpush1.bf16.msra.mxu0 %v1114_v3  ;;  %v1133_v17 = vld [vmem:[%s1609_s1 + $0x154] ss:$8 sps:$4 sm:$0xff]   ;;  %v1142_v19 = vld [vmem:[%s1609_s1 + $0x44] ss:$8 sps:$4 sm:$0xff]   ;;  %v1135_v20 = vld [vmem:[%s1609_s1 + $0x150] ss:$8 sps:$4 sm:$0xff]  }
   0x8   :  { %553 = vmatprep.subr.bf16.mxu0 %v1115_v4  ;;  %v1139_v21 = vld [vmem:[%s1609_s1 + $0x164] ss:$8 sps:$4 sm:$0xff]   ;;  %v1144_v22 = vld [vmem:[%s1609_s1 + $0x40] ss:$8 sps:$4 sm:$0xff]   ;;  %v1148_v23 = vld [vmem:[%s1609_s1 + $0x54] ss:$8 sps:$4 sm:$0xff]  }
   0x9   :  { %509 = vmatpush1.bf16.msra.mxu1 %v1126_v9  ;;  %v1141_v24 = vld [vmem:[%s1609_s1 + $0x160] ss:$8 sps:$4 sm:$0xff]   ;;  %v1145_v25 = vld [vmem:[%s1609_s1 + $0x174] ss:$8 sps:$4 sm:$0xff]   ;;  %v1150_v26 = vld [vmem:[%s1609_s1 + $0x50] ss:$8 sps:$4 sm:$0xff]  }
   0xa   :  { %510 = vmatprep.subr.bf16.mxu1 %v1130_v12  ;;  %v1154_v27 = vld [vmem:[%s1609_s1 + $0x64] ss:$8 sps:$4 sm:$0xff]   ;;  %v1147_v28 = vld [vmem:[%s1609_s1 + $0x170] ss:$8 sps:$4 sm:$0xff]   ;;  %v1156_v30 = vld [vmem:[%s1609_s1 + $0x60] ss:$8 sps:$4 sm:$0xff]  }
   0xb   :  { %554 = vmatpush1.bf16.msra.mxu0 %v1117_v7  ;;  %v1151_v29 = vld [vmem:[%s1609_s1 + $0x184] ss:$8 sps:$4 sm:$0xff]   ;;  %v1160_v31 = vld [vmem:[%s1609_s1 + $0x74] ss:$8 sps:$4 sm:$0xff]   ;;  %v1153_v32 = vld [vmem:[%s1609_s1 + $0x180] ss:$8 sps:$4 sm:$0xff]  }
   0xc   :  { %555 = vmatprep.subr.bf16.mxu0 %v1121_v10  ;;  %v1157_v33 = vld [vmem:[%s1609_s1 + $0x194] ss:$8 sps:$4 sm:$0xff]   ;;  %v1162_v34 = vld [vmem:[%s1609_s1 + $0x70] ss:$8 sps:$4 sm:$0xff]   ;;  %v1166_v35 = vld [vmem:[%s1609_s1 + $0x84] ss:$8 sps:$4 sm:$0xff]  }
   0xd   :  { %511 = vmatpush1.bf16.msra.mxu1 %v1132_v14  ;;  %v1159_v36 = vld [vmem:[%s1609_s1 + $0x190] ss:$8 sps:$4 sm:$0xff]   ;;  %v1163_v37 = vld [vmem:[%s1609_s1 + $0x1a4] ss:$8 sps:$4 sm:$0xff]   ;;  %v1168_v38 = vld [vmem:[%s1609_s1 + $0x80] ss:$8 sps:$4 sm:$0xff]  }
   0xe   :  { %512 = vmatprep.subr.bf16.mxu1 %v1136_v15  ;;  %v1172_v39 = vld [vmem:[%s1609_s1 + $0x94] ss:$8 sps:$4 sm:$0xff]   ;;  %v1165_v40 = vld [vmem:[%s1609_s1 + $0x1a0] ss:$8 sps:$4 sm:$0xff]   ;;  %v1174_v42 = vld [vmem:[%s1609_s1 + $0x90] ss:$8 sps:$4 sm:$0xff]  }
   0xf   :  { %556 = vmatpush1.bf16.msra.mxu0 %v1123_v11  ;;  %v1169_v41 = vld [vmem:[%s1609_s1 + $0x1b4] ss:$8 sps:$4 sm:$0xff]   ;;  %v1178_v43 = vld [vmem:[%s1609_s1 + $0xa4] ss:$8 sps:$4 sm:$0xff]   ;;  %v1171_v45 = vld [vmem:[%s1609_s1 + $0x1b0] ss:$8 sps:$4 sm:$0xff]  }
  0x10   :  { %557 = vmatprep.subr.bf16.mxu0 %v1127_v13  ;;  %v1201_v44 = vld [vmem:[%s1610_s0 + $0xc] ss:$20 sps:$4 sm:$0xff]   ;;  %v1184_v48 = vld [vmem:[%s1609_s1 + $0xb4] ss:$8 sps:$4 sm:$0xff]   ;;  %v1186_v51 = vld [vmem:[%s1609_s1 + $0xb0] ss:$8 sps:$4 sm:$0xff]  }
  0x11   :  { %513 = vmatpush1.bf16.msra.mxu1 %v1138_v18  ;;  %v1175_v46 = vld [vmem:[%s1609_s1 + $0x1c4] ss:$8 sps:$4 sm:$0xff]   ;;  %v1180_v47 = vld [vmem:[%s1609_s1 + $0xa0] ss:$8 sps:$4 sm:$0xff]   ;;  %581 = vmatprep.mubr.bf16.mxu0 %v1201_v44  ;;  %v1181_v50 = vld [vmem:[%s1609_s1 + $0x1d4] ss:$8 sps:$4 sm:$0xff]  }
  0x12   :  { %514 = vmatprep.subr.bf16.mxu1 %v1142_v19  ;;  %v1177_v49 = vld [vmem:[%s1609_s1 + $0x1c0] ss:$8 sps:$4 sm:$0xff]   ;;  %v1190_v52 = vld [vmem:[%s1609_s1 + $0xc4] ss:$8 sps:$4 sm:$0xff]   ;;  %v1183_v54 = vld [vmem:[%s1609_s1 + $0x1d0] ss:$8 sps:$4 sm:$0xff]  }
  0x13   :  { %558 = vmatpush1.bf16.msra.mxu0 %v1129_v16  ;;  %v1219_v53 = vld [vmem:[%s1610_s0 + $0x4] ss:$20 sps:$4 sm:$0xff]   ;;  %v1192_v56 = vld [vmem:[%s1609_s1 + $0xc0] ss:$8 sps:$4 sm:$0xff]   ;;  %v1196_v57 = vld [vmem:[%s1609_s1 + $0xd4] ss:$8 sps:$4 sm:$0xff]  }
  0x14   :  { %559 = vmatprep.subr.bf16.mxu0 %v1133_v17  ;;  %v1187_v55 = vld [vmem:[%s1609_s1 + $0x1e4] ss:$8 sps:$4 sm:$0xff]   ;;  %v1189_v58 = vld [vmem:[%s1609_s1 + $0x1e0] ss:$8 sps:$4 sm:$0xff]   ;;  %538 = vmatprep.mubr.bf16.mxu1 %v1219_v53  ;;  %v1193_v59 = vld [vmem:[%s1609_s1 + $0x1f4] ss:$8 sps:$4 sm:$0xff]  }
  0x15   :  { %515 = vmatpush1.bf16.msra.mxu1 %v1144_v22  ;;  %v1198_v60 = vld [vmem:[%s1609_s1 + $0xd0] ss:$8 sps:$4 sm:$0xff]   ;;  %v1205_v61 = vld [vmem:[%s1609_s1 + $0xe4] ss:$8 sps:$4 sm:$0xff]   ;;  %v1207_v0 = vld [vmem:[%s1609_s1 + $0xe0] ss:$8 sps:$4 sm:$0xff]  }
  0x16   :  { %516 = vmatprep.subr.bf16.mxu1 %v1148_v23  ;;  %v1195_v62 = vld [vmem:[%s1609_s1 + $0x1f0] ss:$8 sps:$4 sm:$0xff]   ;;  %v1204_v63 = vld [vmem:[%s1609_s1 + $0x204] ss:$8 sps:$4 sm:$0xff]   ;;  %v1211_v1 = vld [vmem:[%s1609_s1 + $0xf4] ss:$8 sps:$4 sm:$0xff]  }
  0x17   :  { %560 = vmatpush1.bf16.msra.mxu0 %v1135_v20  ;;  %v1199_v2 = vld [vmem:[%s1610_s0 + $0x8] ss:$20 sps:$4 sm:$0xff]   ;;  %v1213_v4 = vld [vmem:[%s1609_s1 + $0xf0] ss:$8 sps:$4 sm:$0xff]   ;;  %v1217_v6 = vld [vmem:[%s1610_s0] ss:$20 sps:$4 sm:$0xff]  }
  0x18   :  { %561 = vmatprep.subr.bf16.mxu0 %v1139_v21  ;;  %v1202_v3 = vld [vmem:[%s1609_s1 + $0x200] ss:$8 sps:$4 sm:$0xff]   ;;  %v1210_v5 = vld [vmem:[%s1609_s1 + $0x214] ss:$8 sps:$4 sm:$0xff]   ;;  %v1208_v7 = vld [vmem:[%s1609_s1 + $0x210] ss:$8 sps:$4 sm:$0xff]  }
  0x19   :  { %517 = vmatpush1.bf16.msra.mxu1 %v1150_v26  ;;  %v1216_v8 = vld [vmem:[%s1609_s1 + $0x224] ss:$8 sps:$4 sm:$0xff]   ;;  %v1248_v9 = vmov 0   ;;  %v1214_v10 = vld [vmem:[%s1609_s1 + $0x220] ss:$8 sps:$4 sm:$0xff]   ;;  %v1228_v18 = vld [vmem:[%s1611_s3 + $0x50] sm:$0xff]  }
  0x1a   :  { %518 = vmatprep.subr.bf16.mxu1 %v1154_v27  ;;  %v1222_v11 = vld [vmem:[%s1609_s1 + $0x234] ss:$8 sps:$4 sm:$0xff]   ;;  %v1220_v12 = vld [vmem:[%s1609_s1 + $0x230] ss:$8 sps:$4 sm:$0xff]   ;;  %v1224_v13 = vld [vmem:[%s1611_s3 + $0x40] sm:$0xff]  }
  0x1b   :  { %562 = vmatpush1.bf16.msra.mxu0 %v1141_v24  ;;  %v1223_v14 = vld [vmem:[%s1610_s0 + $0x10] ss:$20 sps:$4 sm:$0xff]   ;;  %v1226_v16 = vld [vmem:[%s1611_s3 + $0x48] sm:$0xff]   ;;  %v1230_v20 = vld [vmem:[%s1611_s3 + $0x58] sm:$0xff]  }
  0x1c   :  { %563 = vmatprep.subr.bf16.mxu0 %v1145_v25  ;;  %v1225_v15 = vld [vmem:[%s1611_s3] sm:$0xff]   ;;  %v1227_v17 = vld [vmem:[%s1611_s3 + $0x8] sm:$0xff]   ;;  %v1229_v19 = vld [vmem:[%s1611_s3 + $0x10] sm:$0xff]  }
  0x1d   :  { %519 = vmatpush1.bf16.msra.mxu1 %v1156_v30  ;;  %v1231_v21 = vld [vmem:[%s1611_s3 + $0x18] sm:$0xff]   ;;  %v1232_v22 = vld [vmem:[%s1611_s3 + $0x60] sm:$0xff]   ;;  %v1234_v24 = vld [vmem:[%s1611_s3 + $0x68] sm:$0xff]   ;;  %v1249_v30 = vmov 0.0  }
  0x1e   :  { %520 = vmatprep.subr.bf16.mxu1 %v1160_v31  ;;  %v1233_v23 = vld [vmem:[%s1611_s3 + $0x20] sm:$0xff]   ;;  %v1235_v25 = vld [vmem:[%s1611_s3 + $0x28] sm:$0xff]   ;;  %v1236_v26 = vld [vmem:[%s1611_s3 + $0x70] sm:$0xff]  }
  0x1f   :  { %564 = vmatpush1.bf16.msra.mxu0 %v1147_v28  ;;  %v1237_v27 = vld [vmem:[%s1611_s3 + $0x30] sm:$0xff]   ;;  %v1238_v28 = vld [vmem:[%s1611_s3 + $0x78] sm:$0xff]   ;;  %v1240_v31 = vld [vmem:[%s1612_s5] sm:$0xff]  }
  0x20   :  { %565 = vmatprep.subr.bf16.mxu0 %v1151_v29  ;;  %v1239_v29 = vld [vmem:[%s1611_s3 + $0x38] sm:$0xff]  }
  0x21   :  { %521 = vmatpush1.bf16.msra.mxu1 %v1162_v34  ;;  %v1243_v34 = vld [vmem:[%s1612_s5 + $0x18] sm:$0xff]  }
  0x22   :  { %522 = vmatprep.subr.bf16.mxu1 %v1166_v35  ;;  %v1244_v35 = vld [vmem:[%s1612_s5 + $0x20] sm:$0xff]  }
  0x23   :  { %566 = vmatpush1.bf16.msra.mxu0 %v1153_v32  ;;  %v1241_v32 = vld [vmem:[%s1612_s5 + $0x8] sm:$0xff]  }
  0x24   :  { %567 = vmatprep.subr.bf16.mxu0 %v1157_v33  ;;  %v1242_v33 = vld [vmem:[%s1612_s5 + $0x10] sm:$0xff]  }
  0x25   :  { %523 = vmatpush1.bf16.msra.mxu1 %v1168_v38 }
  0x26   :  { %524 = vmatprep.subr.bf16.mxu1 %v1172_v39 }
  0x27   :  { %568 = vmatpush1.bf16.msra.mxu0 %v1159_v36  ;;  %v107_v36 = vlaneseq }
  0x28   :  { %569 = vmatprep.subr.bf16.mxu0 %v1163_v37 }
  0x29   :  { %525 = vmatpush1.bf16.msra.mxu1 %v1174_v42  ;;  %v108_v37 = vshrl.u32 %v107_v36, 7 }
  0x2a   :  { %526 = vmatprep.subr.bf16.mxu1 %v1178_v43 }
  0x2b   :  { %570 = vmatpush1.bf16.msra.mxu0 %v1165_v40  ;;  %v109_v39 = vsub.s32 0, %v108_v37  ;;  %v113_v42 = vsub.s32 1, %v108_v37 }
  0x2c   :  { %571 = vmatprep.subr.bf16.mxu0 %v1169_v41  ;;  %v105_v41 = vld [vmem:[%s1613_s2] sm:$0x3] }
  0x2d   :  { %527 = vmatpush1.bf16.msra.mxu1 %v1180_v47 }
  0x2e   :  { %528 = vmatprep.subr.bf16.mxu1 %v1184_v48 }
  0x2f   :  { %572 = vmatpush1.bf16.msra.mxu0 %v1171_v45  ;;  %v110_v45 = vrot.slane %v105_v41, %v109_v39 }
  0x30   :  { %573 = vmatprep.subr.bf16.mxu0 %v1175_v46  ;;  %v114_v46 = vrot.slane %v105_v41, %v113_v42 }
  0x31   :  { %529 = vmatpush1.bf16.msra.mxu1 %v1186_v51 }
  0x32   :  { %530 = vmatprep.subr.bf16.mxu1 %v1190_v52 }
  0x33   :  { %574 = vmatpush1.bf16.msra.mxu0 %v1177_v49 }
  0x34   :  { %575 = vmatprep.subr.bf16.mxu0 %v1181_v50 }
  0x35   :  { %531 = vmatpush1.bf16.msra.mxu1 %v1192_v56 }
  0x36   :  { %532 = vmatprep.subr.bf16.mxu1 %v1196_v57 }
  0x37   :  { %576 = vmatpush1.bf16.msra.mxu0 %v1183_v54 }
  0x38   :  { %577 = vmatprep.subr.bf16.mxu0 %v1187_v55 }
  0x39   :  { %533 = vmatpush1.bf16.msra.mxu1 %v1198_v60 }
  0x3a   :  { %534 = vmatprep.subr.bf16.mxu1 %v1205_v61 }
  0x3b   :  { %578 = vmatpush1.bf16.msra.mxu0 %v1189_v58 }
  0x3c   :  { %579 = vmatprep.subr.bf16.mxu0 %v1193_v59 }
  0x3d   :  { %535 = vmatpush1.bf16.msra.mxu1 %v1207_v0 }
  0x3e   :  { %536 = vmatprep.subr.bf16.mxu1 %v1211_v1  ;;  %v1245_v1 = vld [vmem:[%s1612_s5 + $0x28] sm:$0xff]  }
  0x3f   :  { %580 = vmatpush1.bf16.msra.mxu0 %v1195_v62 }
  0x40   :  { %592 = vmatprep.subr.bf16.mxu0 %v1204_v63 }
  0x41   :  { %537 = vmatpush1.bf16.msra.mxu1 %v1213_v4 }
  0x42   :  { %582 = vmatmul.mubr.bf16.vlgmr.msra.gmra.mrb[0].mxu0 %v1199_v2  ;;  %1074 = vmatprep.subr.bf16.mxu1 %v1249_v30  ;;  %v1246_v2 = vld [vmem:[%s1612_s5 + $0x30] sm:$0xff]  }
  0x43   :  { %593 = vmatpush1.bf16.msra.mxu0 %v1202_v3  ;;  %624 = vmatprep.mubr.bf16.mxu0 %v1248_v9  ;;  %v1247_v3 = vld [vmem:[%s1612_s5 + $0x38] sm:$0xff]  }
  0x44   :  { %594 = vmatprep.subr.bf16.mxu0 %v1210_v5  ;;  %539 = vmatmul.mubr.bf16.vlgmr.msra.gmra.mrb[0].mxu1 %v1217_v6  ;;  %v1017_v5 = vld [vmem:[%s1614_s4] ss:$0 sm:$0xff] }
  0x45   :  { %1075 = vmatpush3.bf16.msra.mxu1 %v1240_v31  ;;  %1090 = vmatprep.mubr.msk.bf16.mxu1 %vm1250_vm1, %v1249_v30 }
  0x46   :  { %1076 = vmatprep.subr.bf16.mxu1 %v1249_v30 }
  0x47   :  { %595 = vmatpush1.bf16.msra.mxu0 %v1208_v7 }
  0x48   :  { %596 = vmatprep.subr.bf16.mxu0 %v1216_v8 }
  0x49   :  { %1077 = vmatpush3.bf16.msra.mxu1 %v1241_v32 }
  0x4a   :  { %1078 = vmatprep.subr.bf16.mxu1 %v1249_v30 }
  0x4b   :  { %597 = vmatpush1.bf16.msra.mxu0 %v1214_v10 }
  0x4c   :  { %598 = vmatprep.subr.bf16.mxu0 %v1222_v11 }
  0x4d   :  { %1079 = vmatpush3.bf16.msra.mxu1 %v1242_v33 }
  0x4e   :  { %1080 = vmatprep.subr.bf16.mxu1 %v1249_v30 }
  0x4f   :  { %599 = vmatpush1.bf16.msra.mxu0 %v1220_v12 }
  0x50   :  { %1043 = vmatprep.subr.bf16.mxu0 %v1224_v13 }
  0x51   :  { %1081 = vmatpush3.bf16.msra.mxu1 %v1243_v34 }
  0x52   :  { %1016 = vmatmul.mubr.msk.bf16.vlgmr.msra.gmra.mrb[0].mxu0 %vm502_vm0, %v1223_v14  ;;  %1082 = vmatprep.subr.bf16.mxu1 %v1249_v30 }
  0x53   :  { %1044 = vmatpush3.bf16.msra.mxu0 %v1225_v15 }
  0x54   :  { %1045 = vmatprep.subr.bf16.mxu0 %v1226_v16  ;;  %v1034_v16 = vld [vmem:[%s1615_s6] ss:$0 sm:$0xff] }
  0x55   :  { %1083 = vmatpush3.bf16.msra.mxu1 %v1244_v35 }
  0x56   :  { %1084 = vmatprep.subr.bf16.mxu1 %v1249_v30 }
  0x57   :  { %1046 = vmatpush3.bf16.msra.mxu0 %v1227_v17 }
  0x58   :  { %1047 = vmatprep.subr.bf16.mxu0 %v1228_v18 }
  0x59   :  { %1085 = vmatpush3.bf16.msra.mxu1 %v1245_v1 }
  0x5a   :  { %1086 = vmatprep.subr.bf16.mxu1 %v1249_v30 }
  0x5b   :  { %1048 = vmatpush3.bf16.msra.mxu0 %v1229_v19 }
  0x5c   :  { %1049 = vmatprep.subr.bf16.mxu0 %v1230_v20 }
  0x5d   :  { %1087 = vmatpush3.bf16.msra.mxu1 %v1246_v2 }
  0x5e   :  { %1088 = vmatprep.subr.bf16.mxu1 %v1249_v30 }
  0x5f   :  { %1050 = vmatpush3.bf16.msra.mxu0 %v1231_v21 }
  0x60   :  { %1051 = vmatprep.subr.bf16.mxu0 %v1232_v22 }
  0x61   :  { %1089 = vmatpush3.bf16.msra.mxu1 %v1247_v3 }
  0x63   :  { %1052 = vmatpush3.bf16.msra.mxu0 %v1233_v23 }
  0x64   :  { %1053 = vmatprep.subr.bf16.mxu0 %v1234_v24 }
  0x67   :  { %1054 = vmatpush3.bf16.msra.mxu0 %v1235_v25 }
  0x68   :  { %1055 = vmatprep.subr.bf16.mxu0 %v1236_v26 }
  0x6b   :  { %1056 = vmatpush3.bf16.msra.mxu0 %v1237_v27 }
  0x6c   :  { %1057 = vmatprep.subr.bf16.mxu0 %v1238_v28 }
  0x6f   :  { %1058 = vmatpush3.bf16.msra.mxu0 %v1239_v29 }
 0x117   :  { %v540_v38 = vpop.f32.mrb[0].mxu1 }
 0x118   :  { %v542_v40 = vpop.f32.mrb[1].mxu1  ;;  %v541_v47 = vadd.f32 %v540_v38, %v110_v45 }
 0x119   :  { %v544_v43 = vpop.f32.mrb[2].mxu1  ;;  %v543_v48 = vadd.f32 %v542_v40, %v114_v46 }
 0x11a   :  { %v546_v44 = vpop.f32.mrb[3].mxu1  ;;  %v545_v50 = vadd.f32 %v544_v43, %v110_v45 }
 0x11b   :  { %v547_v53 = vadd.f32 %v546_v44, %v114_v46 }
 0x125   :  { %v626_v49 = vpop.f32.mrb[0].mxu0 }
 0x126   :  { %v1095_v51 = vadd.f32 %v626_v49, %v541_v47  ;;  %v628_v52 = vpop.f32.mrb[1].mxu0 }
 0x127   :  { %v1097_v54 = vadd.f32 %v628_v52, %v543_v48  ;;  %v630_v55 = vpop.f32.mrb[2].mxu0 }
 0x128   :  { %v1099_v56 = vadd.f32 %v630_v55, %v545_v50  ;;  %v632_v57 = vpop.f32.mrb[3].mxu0  ;;  %v635_v59 = vmax.f32 %v1095_v51, 0.0 }
 0x129   :  { %v1101_v58 = vadd.f32 %v632_v57, %v547_v53  ;;  %v636_v61 = vmax.f32 %v1097_v54, 0.0 }
 0x12a   :  { %v637_v60 = vmax.f32 %v1099_v56, 0.0 }
 0x12b   :  { %v638_v62 = vmax.f32 %v1101_v58, 0.0 }
 0x12c   :  { %v639_v63 = vpack.c.bf16 %v637_v60, %v635_v59 }
 0x12d   :  { %v640_v0 = vpack.c.bf16 %v638_v62, %v636_v61 }
 0x12f   :  { %808 = vmatprep.mubr.bf16.mxu0 %v640_v0 }
 0x130   :  { %809 = vmatmul.mubr.bf16.vlgmr.msra.gmra.mrb[4].mxu0 %v639_v63 }
 0x203   :  { %v1059_v4 = vpop.f32.mrb[4].mxu0 }
 0x204   :  { %v1060_v6 = vpop.f32.mrb[5].mxu0 }
 0x205   :  { %v1061_v7 = vadd.f32 %v1060_v6, %v1059_v4  ;;  %v1062_v8 = vpop.f32.mrb[6].mxu0 }
 0x206   :  { %v1063_v9 = vpop.f32.mrb[7].mxu0 }
 0x207   :  { %v811_v10 = vadd.f32 %v1061_v7, %v1017_v5  ;;  %v1064_v11 = vadd.f32 %v1063_v9, %v1062_v8 }
 0x209   :  { %v814_v12 = vadd.f32 %v1064_v11, %v1017_v5  ;;  %v817_v13 = vmax.f32 %v811_v10, 0.0 }
 0x20b   :  { %v818_v14 = vmax.f32 %v814_v12, 0.0 }
 0x20d   :  { %v819_v15 = vpack.c.bf16 %v818_v14, %v817_v13 }
 0x20f   :  { %1091 = vmatmul.mubr.bf16.vlgmr.msra.gmra.mrb[4].mxu1 %v819_v15 }
 0x2e2   :  { %v925_v17 = vpop.f32.mrb[4].mxu1 }
 0x2e3   :  { %v926_v18 = vadd.f32 %v1034_v16, %v925_v17  ;;  %v1092_v19 = vpop.f32.mrb[5].mxu1 }
 0x2e4   :  { %v928_v20 = vpop.f32.mrb[6].mxu1 }
 0x2e5   :  { %933 = vst.msk [vmem:[%s1616_s7] sm:$0xff] %vm932_vm2, %v926_v18  ;;  %v929_v21 = vadd.f32 %v1034_v16, %v928_v20  ;;  %v1093_v22 = vpop.f32.mrb[7].mxu1 }
 0x2e7   :  { %934 = vst.msk [vmem:[%s1616_s7 + $0x8] sm:$0xff] %vm932_vm2, %v929_v21 }

</bundles_post_ra>
